<compile_context>
chip_gen: v6e
topology: v6e:2x2x1
jax: 0.10.0
libtpu: 0.0.40
codegen_flags: <defaults>
</compile_context>

<pallas_src>
import jax
import jax.numpy as jnp
from jax.experimental import pallas as pl
from jax.experimental.pallas import tpu as pltpu


IN_F, H1_F, H2_F, OUT_F = 8, 6, 4, 1

LANES = 128            # vreg lane width
R_CHUNK = 16           # sublane rows per in-kernel chunk (2 vregs per feature slab)
TILE_R_CAP = 1024      # max rows per grid step: 1024*128 = 128K batch elems (~4 MiB x)
TARGET_GRID_STEPS = 4  # keep several grid steps (v7x 2-TC sharding, warm pipeline)


def _cdiv(a, b):
    return -(-a // b)


def _round_up(x, m):
    return ((x + m - 1) // m) * m


def _sigmoid(z):
    # sigmoid(z) == 0.5 * tanh(z/2) + 0.5 : single EUP transcendental, no divide.
    return 0.5 * jnp.tanh(0.5 * z) + 0.5


def mlp_kernel(x_ref, w1_ref, b1_ref, w2_ref, b2_ref, w3_ref, b3_ref, o_ref):
    # x_ref: (IN_F, TILE_R, 128) VMEM block; o_ref: (TILE_R, 128) VMEM block.
    tile_r = x_ref.shape[1]
    n_chunks = tile_r // R_CHUNK

    # Hoist every SMEM scalar read out of the chunk loop (read once per grid step).
    w1 = [[w1_ref[j, k] for k in range(IN_F)] for j in range(H1_F)]
    b1 = [b1_ref[j] for j in range(H1_F)]
    w2 = [[w2_ref[j, k] for k in range(H1_F)] for j in range(H2_F)]
    b2 = [b2_ref[j] for j in range(H2_F)]
    w3 = [[w3_ref[j, k] for k in range(H2_F)] for j in range(OUT_F)]
    b3 = [b3_ref[j] for j in range(OUT_F)]

    def dense_sigmoid(slabs, w, b):
        # out_j = sigmoid(sum_k w[j][k] * slabs[k] + b[j]); fully unrolled
        # scalar-broadcast MACs on dense (R_CHUNK, 128) slabs (VPU + EUP only).
        outs = []
        for j in range(len(w)):
            acc = slabs[0] * w[j][0]
            for k in range(1, len(w[j])):
                acc = acc + slabs[k] * w[j][k]
            outs.append(_sigmoid(acc + b[j]))
        return outs

    @pl.loop(0, n_chunks)
    def _(c):
        r0 = pl.multiple_of(c * R_CHUNK, R_CHUNK)
        xs = [x_ref[k, pl.ds(r0, R_CHUNK), :] for k in range(IN_F)]
        h1 = dense_sigmoid(xs, w1, b1)
        h2 = dense_sigmoid(h1, w2, b2)
        h3 = dense_sigmoid(h2, w3, b3)
        o_ref[pl.ds(r0, R_CHUNK), :] = h3[0]


def _mlp_forward_flat(x2, params):
    """x2: (N, 8) float32 -> (N, 1) float32."""
    w1, b1, w2, b2, w3, b3 = params
    n = x2.shape[0]

    rows = _cdiv(max(n, 1), LANES)
    tile_r = min(TILE_R_CAP,
                 _round_up(max(_cdiv(rows, TARGET_GRID_STEPS), 1), R_CHUNK))
    rows_pad = _round_up(rows, tile_r)
    n_pad = rows_pad * LANES
    grid = (rows_pad // tile_r,)

    # Single transpose(+pad only if needed) pass to put the batch on the
    # (sublane, lane) axes.
    # TODO(synk): for a fully roofline-bound path, accept feature-major input
    # from the caller (or de-interleave in-kernel) to drop this transpose pass.
    xt = x2.T.astype(jnp.float32)                        # (8, N)
    if n_pad != n:
        xt = jnp.pad(xt, ((0, 0), (0, n_pad - n)))
    xt = xt.reshape(IN_F, rows_pad, LANES)

    smem = pl.BlockSpec(memory_space=pltpu.SMEM)
    n_elems = rows_pad * LANES

    out = pl.pallas_call(
        mlp_kernel,
        out_shape=jax.ShapeDtypeStruct((rows_pad, LANES), jnp.float32),
        grid=grid,
        in_specs=[
            pl.BlockSpec((IN_F, tile_r, LANES), lambda i: (0, i, 0)),  # streamed x
            smem, smem,   # w1, b1
            smem, smem,   # w2, b2
            smem, smem,   # w3, b3
        ],
        out_specs=pl.BlockSpec((tile_r, LANES), lambda i: (i, 0)),
        compiler_params=pltpu.CompilerParams(
            dimension_semantics=("parallel",),
            vmem_limit_bytes=32 * 1024 * 1024,
        ),
        cost_estimate=pl.CostEstimate(
            flops=152 * n_elems,            # 96 + 48 + 8 MAC flops per element
            transcendentals=11 * n_elems,   # 6 + 4 + 1 sigmoids per element
            bytes_accessed=36 * n_elems,    # 32 B read + 4 B written per element
        ),
    )(xt, w1, b1, w2, b2, w3, b3)

    return out.reshape(n_pad)[:n][:, None]


@jax.jit
def mlp_forward(x, params):
    """x: (..., 8) float32. Returns (..., 1), matching nn.Linear batching."""
    lead = x.shape[:-1]
    n = 1
    for d in lead:
        n *= d
    y = _mlp_forward_flat(x.reshape(n, IN_F), params)
    return y.reshape(lead + (1,))


def init_linear_params(key, in_features, out_features):
    # PyTorch nn.Linear init: U(-1/sqrt(in), 1/sqrt(in)); weight stored (out, in).
    kw, kb = jax.random.split(key)
    bound = 1.0 / (in_features ** 0.5)
    w = jax.random.uniform(kw, (out_features, in_features), jnp.float32,
                           minval=-bound, maxval=bound)
    b = jax.random.uniform(kb, (out_features,), jnp.float32,
                           minval=-bound, maxval=bound)
    return w, b


def reference_forward(x, params):
    w1, b1, w2, b2, w3, b3 = params
    h1 = jax.nn.sigmoid(x @ w1.T + b1)
    h2 = jax.nn.sigmoid(h1 @ w2.T + b2)
    return jax.nn.sigmoid(h2 @ w3.T + b3)


if __name__ == "__main__":
    key = jax.random.PRNGKey(0)
    k_x, k1, k2, k3 = jax.random.split(key, 4)

    # "multiple dimension" input: nn.Linear batches over all leading dims.
    x = jax.random.normal(k_x, (4, 3, IN_F), jnp.float32)

    w1, b1 = init_linear_params(k1, IN_F, H1_F)
    w2, b2 = init_linear_params(k2, H1_F, H2_F)
    w3, b3 = init_linear_params(k3, H2_F, OUT_F)
    params = (w1, b1, w2, b2, w3, b3)

    out = jax.block_until_ready(mlp_forward(x, params))
    ref = reference_forward(x, params)

    assert out.shape == (4, 3, 1), out.shape
    assert jnp.allclose(out, ref, atol=1e-4, rtol=1e-4), (
        "mismatch vs reference, max abs err = %e"
        % float(jnp.max(jnp.abs(out - ref))))

    print("KERNEL_OK")
</pallas_src>

<mosaic_0001>
module attributes {stable_mosaic.version = 11 : i64} {
  func.func @mlp_kernel(%arg0: i32, %arg1: memref<8x16x128xf32, #tpu.memory_space<vmem>>, %arg2: memref<6x8xf32, #tpu.memory_space<smem>>, %arg3: memref<6xf32, #tpu.memory_space<smem>>, %arg4: memref<4x6xf32, #tpu.memory_space<smem>>, %arg5: memref<4xf32, #tpu.memory_space<smem>>, %arg6: memref<1x4xf32, #tpu.memory_space<smem>>, %arg7: memref<1xf32, #tpu.memory_space<smem>>, %arg8: memref<16x128xf32, #tpu.memory_space<vmem>>) attributes {dimension_semantics = [#tpu.dimension_semantics<parallel>], iteration_bounds = array<i64: 1>, scalar_prefetch = 0 : i64, scratch_operands = 0 : i64, tpu.core_type = #tpu.core_type<tc>, window_params = [{transform_indices = @transform_0, window_bounds = array<i64: 8, 16, 128>}, {transform_indices = @transform_1, window_bounds = array<i64: 6, 8>}, {transform_indices = @transform_2, window_bounds = array<i64: 6>}, {transform_indices = @transform_3, window_bounds = array<i64: 4, 6>}, {transform_indices = @transform_4, window_bounds = array<i64: 4>}, {transform_indices = @transform_5, window_bounds = array<i64: 1, 4>}, {transform_indices = @transform_6, window_bounds = array<i64: 1>}, {transform_indices = @transform_7, window_bounds = array<i64: 16, 128>}]} {
    %c0 = arith.constant 0 : index
    %c0_0 = arith.constant 0 : index
    %0 = memref.load %arg2[%c0, %c0_0] : memref<6x8xf32, #tpu.memory_space<smem>>
    %c0_1 = arith.constant 0 : index
    %c1 = arith.constant 1 : index
    %1 = memref.load %arg2[%c0_1, %c1] : memref<6x8xf32, #tpu.memory_space<smem>>
    %c0_2 = arith.constant 0 : index
    %c2 = arith.constant 2 : index
    %2 = memref.load %arg2[%c0_2, %c2] : memref<6x8xf32, #tpu.memory_space<smem>>
    %c0_3 = arith.constant 0 : index
    %c3 = arith.constant 3 : index
    %3 = memref.load %arg2[%c0_3, %c3] : memref<6x8xf32, #tpu.memory_space<smem>>
    %c0_4 = arith.constant 0 : index
    %c4 = arith.constant 4 : index
    %4 = memref.load %arg2[%c0_4, %c4] : memref<6x8xf32, #tpu.memory_space<smem>>
    %c0_5 = arith.constant 0 : index
    %c5 = arith.constant 5 : index
    %5 = memref.load %arg2[%c0_5, %c5] : memref<6x8xf32, #tpu.memory_space<smem>>
    %c0_6 = arith.constant 0 : index
    %c6 = arith.constant 6 : index
    %6 = memref.load %arg2[%c0_6, %c6] : memref<6x8xf32, #tpu.memory_space<smem>>
    %c0_7 = arith.constant 0 : index
    %c7 = arith.constant 7 : index
    %7 = memref.load %arg2[%c0_7, %c7] : memref<6x8xf32, #tpu.memory_space<smem>>
    %c1_8 = arith.constant 1 : index
    %c0_9 = arith.constant 0 : index
    %8 = memref.load %arg2[%c1_8, %c0_9] : memref<6x8xf32, #tpu.memory_space<smem>>
    %c1_10 = arith.constant 1 : index
    %c1_11 = arith.constant 1 : index
    %9 = memref.load %arg2[%c1_10, %c1_11] : memref<6x8xf32, #tpu.memory_space<smem>>
    %c1_12 = arith.constant 1 : index
    %c2_13 = arith.constant 2 : index
    %10 = memref.load %arg2[%c1_12, %c2_13] : memref<6x8xf32, #tpu.memory_space<smem>>
    %c1_14 = arith.constant 1 : index
    %c3_15 = arith.constant 3 : index
    %11 = memref.load %arg2[%c1_14, %c3_15] : memref<6x8xf32, #tpu.memory_space<smem>>
    %c1_16 = arith.constant 1 : index
    %c4_17 = arith.constant 4 : index
    %12 = memref.load %arg2[%c1_16, %c4_17] : memref<6x8xf32, #tpu.memory_space<smem>>
    %c1_18 = arith.constant 1 : index
    %c5_19 = arith.constant 5 : index
    %13 = memref.load %arg2[%c1_18, %c5_19] : memref<6x8xf32, #tpu.memory_space<smem>>
    %c1_20 = arith.constant 1 : index
    %c6_21 = arith.constant 6 : index
    %14 = memref.load %arg2[%c1_20, %c6_21] : memref<6x8xf32, #tpu.memory_space<smem>>
    %c1_22 = arith.constant 1 : index
    %c7_23 = arith.constant 7 : index
    %15 = memref.load %arg2[%c1_22, %c7_23] : memref<6x8xf32, #tpu.memory_space<smem>>
    %c2_24 = arith.constant 2 : index
    %c0_25 = arith.constant 0 : index
    %16 = memref.load %arg2[%c2_24, %c0_25] : memref<6x8xf32, #tpu.memory_space<smem>>
    %c2_26 = arith.constant 2 : index
    %c1_27 = arith.constant 1 : index
    %17 = memref.load %arg2[%c2_26, %c1_27] : memref<6x8xf32, #tpu.memory_space<smem>>
    %c2_28 = arith.constant 2 : index
    %c2_29 = arith.constant 2 : index
    %18 = memref.load %arg2[%c2_28, %c2_29] : memref<6x8xf32, #tpu.memory_space<smem>>
    %c2_30 = arith.constant 2 : index
    %c3_31 = arith.constant 3 : index
    %19 = memref.load %arg2[%c2_30, %c3_31] : memref<6x8xf32, #tpu.memory_space<smem>>
    %c2_32 = arith.constant 2 : index
    %c4_33 = arith.constant 4 : index
    %20 = memref.load %arg2[%c2_32, %c4_33] : memref<6x8xf32, #tpu.memory_space<smem>>
    %c2_34 = arith.constant 2 : index
    %c5_35 = arith.constant 5 : index
    %21 = memref.load %arg2[%c2_34, %c5_35] : memref<6x8xf32, #tpu.memory_space<smem>>
    %c2_36 = arith.constant 2 : index
    %c6_37 = arith.constant 6 : index
    %22 = memref.load %arg2[%c2_36, %c6_37] : memref<6x8xf32, #tpu.memory_space<smem>>
    %c2_38 = arith.constant 2 : index
    %c7_39 = arith.constant 7 : index
    %23 = memref.load %arg2[%c2_38, %c7_39] : memref<6x8xf32, #tpu.memory_space<smem>>
    %c3_40 = arith.constant 3 : index
    %c0_41 = arith.constant 0 : index
    %24 = memref.load %arg2[%c3_40, %c0_41] : memref<6x8xf32, #tpu.memory_space<smem>>
    %c3_42 = arith.constant 3 : index
    %c1_43 = arith.constant 1 : index
    %25 = memref.load %arg2[%c3_42, %c1_43] : memref<6x8xf32, #tpu.memory_space<smem>>
    %c3_44 = arith.constant 3 : index
    %c2_45 = arith.constant 2 : index
    %26 = memref.load %arg2[%c3_44, %c2_45] : memref<6x8xf32, #tpu.memory_space<smem>>
    %c3_46 = arith.constant 3 : index
    %c3_47 = arith.constant 3 : index
    %27 = memref.load %arg2[%c3_46, %c3_47] : memref<6x8xf32, #tpu.memory_space<smem>>
    %c3_48 = arith.constant 3 : index
    %c4_49 = arith.constant 4 : index
    %28 = memref.load %arg2[%c3_48, %c4_49] : memref<6x8xf32, #tpu.memory_space<smem>>
    %c3_50 = arith.constant 3 : index
    %c5_51 = arith.constant 5 : index
    %29 = memref.load %arg2[%c3_50, %c5_51] : memref<6x8xf32, #tpu.memory_space<smem>>
    %c3_52 = arith.constant 3 : index
    %c6_53 = arith.constant 6 : index
    %30 = memref.load %arg2[%c3_52, %c6_53] : memref<6x8xf32, #tpu.memory_space<smem>>
    %c3_54 = arith.constant 3 : index
    %c7_55 = arith.constant 7 : index
    %31 = memref.load %arg2[%c3_54, %c7_55] : memref<6x8xf32, #tpu.memory_space<smem>>
    %c4_56 = arith.constant 4 : index
    %c0_57 = arith.constant 0 : index
    %32 = memref.load %arg2[%c4_56, %c0_57] : memref<6x8xf32, #tpu.memory_space<smem>>
    %c4_58 = arith.constant 4 : index
    %c1_59 = arith.constant 1 : index
    %33 = memref.load %arg2[%c4_58, %c1_59] : memref<6x8xf32, #tpu.memory_space<smem>>
    %c4_60 = arith.constant 4 : index
    %c2_61 = arith.constant 2 : index
    %34 = memref.load %arg2[%c4_60, %c2_61] : memref<6x8xf32, #tpu.memory_space<smem>>
    %c4_62 = arith.constant 4 : index
    %c3_63 = arith.constant 3 : index
    %35 = memref.load %arg2[%c4_62, %c3_63] : memref<6x8xf32, #tpu.memory_space<smem>>
    %c4_64 = arith.constant 4 : index
    %c4_65 = arith.constant 4 : index
    %36 = memref.load %arg2[%c4_64, %c4_65] : memref<6x8xf32, #tpu.memory_space<smem>>
    %c4_66 = arith.constant 4 : index
    %c5_67 = arith.constant 5 : index
    %37 = memref.load %arg2[%c4_66, %c5_67] : memref<6x8xf32, #tpu.memory_space<smem>>
    %c4_68 = arith.constant 4 : index
    %c6_69 = arith.constant 6 : index
    %38 = memref.load %arg2[%c4_68, %c6_69] : memref<6x8xf32, #tpu.memory_space<smem>>
    %c4_70 = arith.constant 4 : index
    %c7_71 = arith.constant 7 : index
    %39 = memref.load %arg2[%c4_70, %c7_71] : memref<6x8xf32, #tpu.memory_space<smem>>
    %c5_72 = arith.constant 5 : index
    %c0_73 = arith.constant 0 : index
    %40 = memref.load %arg2[%c5_72, %c0_73] : memref<6x8xf32, #tpu.memory_space<smem>>
    %c5_74 = arith.constant 5 : index
    %c1_75 = arith.constant 1 : index
    %41 = memref.load %arg2[%c5_74, %c1_75] : memref<6x8xf32, #tpu.memory_space<smem>>
    %c5_76 = arith.constant 5 : index
    %c2_77 = arith.constant 2 : index
    %42 = memref.load %arg2[%c5_76, %c2_77] : memref<6x8xf32, #tpu.memory_space<smem>>
    %c5_78 = arith.constant 5 : index
    %c3_79 = arith.constant 3 : index
    %43 = memref.load %arg2[%c5_78, %c3_79] : memref<6x8xf32, #tpu.memory_space<smem>>
    %c5_80 = arith.constant 5 : index
    %c4_81 = arith.constant 4 : index
    %44 = memref.load %arg2[%c5_80, %c4_81] : memref<6x8xf32, #tpu.memory_space<smem>>
    %c5_82 = arith.constant 5 : index
    %c5_83 = arith.constant 5 : index
    %45 = memref.load %arg2[%c5_82, %c5_83] : memref<6x8xf32, #tpu.memory_space<smem>>
    %c5_84 = arith.constant 5 : index
    %c6_85 = arith.constant 6 : index
    %46 = memref.load %arg2[%c5_84, %c6_85] : memref<6x8xf32, #tpu.memory_space<smem>>
    %c5_86 = arith.constant 5 : index
    %c7_87 = arith.constant 7 : index
    %47 = memref.load %arg2[%c5_86, %c7_87] : memref<6x8xf32, #tpu.memory_space<smem>>
    %c0_88 = arith.constant 0 : index
    %48 = memref.load %arg3[%c0_88] : memref<6xf32, #tpu.memory_space<smem>>
    %c1_89 = arith.constant 1 : index
    %49 = memref.load %arg3[%c1_89] : memref<6xf32, #tpu.memory_space<smem>>
    %c2_90 = arith.constant 2 : index
    %50 = memref.load %arg3[%c2_90] : memref<6xf32, #tpu.memory_space<smem>>
    %c3_91 = arith.constant 3 : index
    %51 = memref.load %arg3[%c3_91] : memref<6xf32, #tpu.memory_space<smem>>
    %c4_92 = arith.constant 4 : index
    %52 = memref.load %arg3[%c4_92] : memref<6xf32, #tpu.memory_space<smem>>
    %c5_93 = arith.constant 5 : index
    %53 = memref.load %arg3[%c5_93] : memref<6xf32, #tpu.memory_space<smem>>
    %c0_94 = arith.constant 0 : index
    %c0_95 = arith.constant 0 : index
    %54 = memref.load %arg4[%c0_94, %c0_95] : memref<4x6xf32, #tpu.memory_space<smem>>
    %c0_96 = arith.constant 0 : index
    %c1_97 = arith.constant 1 : index
    %55 = memref.load %arg4[%c0_96, %c1_97] : memref<4x6xf32, #tpu.memory_space<smem>>
    %c0_98 = arith.constant 0 : index
    %c2_99 = arith.constant 2 : index
    %56 = memref.load %arg4[%c0_98, %c2_99] : memref<4x6xf32, #tpu.memory_space<smem>>
    %c0_100 = arith.constant 0 : index
    %c3_101 = arith.constant 3 : index
    %57 = memref.load %arg4[%c0_100, %c3_101] : memref<4x6xf32, #tpu.memory_space<smem>>
    %c0_102 = arith.constant 0 : index
    %c4_103 = arith.constant 4 : index
    %58 = memref.load %arg4[%c0_102, %c4_103] : memref<4x6xf32, #tpu.memory_space<smem>>
    %c0_104 = arith.constant 0 : index
    %c5_105 = arith.constant 5 : index
    %59 = memref.load %arg4[%c0_104, %c5_105] : memref<4x6xf32, #tpu.memory_space<smem>>
    %c1_106 = arith.constant 1 : index
    %c0_107 = arith.constant 0 : index
    %60 = memref.load %arg4[%c1_106, %c0_107] : memref<4x6xf32, #tpu.memory_space<smem>>
    %c1_108 = arith.constant 1 : index
    %c1_109 = arith.constant 1 : index
    %61 = memref.load %arg4[%c1_108, %c1_109] : memref<4x6xf32, #tpu.memory_space<smem>>
    %c1_110 = arith.constant 1 : index
    %c2_111 = arith.constant 2 : index
    %62 = memref.load %arg4[%c1_110, %c2_111] : memref<4x6xf32, #tpu.memory_space<smem>>
    %c1_112 = arith.constant 1 : index
    %c3_113 = arith.constant 3 : index
    %63 = memref.load %arg4[%c1_112, %c3_113] : memref<4x6xf32, #tpu.memory_space<smem>>
    %c1_114 = arith.constant 1 : index
    %c4_115 = arith.constant 4 : index
    %64 = memref.load %arg4[%c1_114, %c4_115] : memref<4x6xf32, #tpu.memory_space<smem>>
    %c1_116 = arith.constant 1 : index
    %c5_117 = arith.constant 5 : index
    %65 = memref.load %arg4[%c1_116, %c5_117] : memref<4x6xf32, #tpu.memory_space<smem>>
    %c2_118 = arith.constant 2 : index
    %c0_119 = arith.constant 0 : index
    %66 = memref.load %arg4[%c2_118, %c0_119] : memref<4x6xf32, #tpu.memory_space<smem>>
    %c2_120 = arith.constant 2 : index
    %c1_121 = arith.constant 1 : index
    %67 = memref.load %arg4[%c2_120, %c1_121] : memref<4x6xf32, #tpu.memory_space<smem>>
    %c2_122 = arith.constant 2 : index
    %c2_123 = arith.constant 2 : index
    %68 = memref.load %arg4[%c2_122, %c2_123] : memref<4x6xf32, #tpu.memory_space<smem>>
    %c2_124 = arith.constant 2 : index
    %c3_125 = arith.constant 3 : index
    %69 = memref.load %arg4[%c2_124, %c3_125] : memref<4x6xf32, #tpu.memory_space<smem>>
    %c2_126 = arith.constant 2 : index
    %c4_127 = arith.constant 4 : index
    %70 = memref.load %arg4[%c2_126, %c4_127] : memref<4x6xf32, #tpu.memory_space<smem>>
    %c2_128 = arith.constant 2 : index
    %c5_129 = arith.constant 5 : index
    %71 = memref.load %arg4[%c2_128, %c5_129] : memref<4x6xf32, #tpu.memory_space<smem>>
    %c3_130 = arith.constant 3 : index
    %c0_131 = arith.constant 0 : index
    %72 = memref.load %arg4[%c3_130, %c0_131] : memref<4x6xf32, #tpu.memory_space<smem>>
    %c3_132 = arith.constant 3 : index
    %c1_133 = arith.constant 1 : index
    %73 = memref.load %arg4[%c3_132, %c1_133] : memref<4x6xf32, #tpu.memory_space<smem>>
    %c3_134 = arith.constant 3 : index
    %c2_135 = arith.constant 2 : index
    %74 = memref.load %arg4[%c3_134, %c2_135] : memref<4x6xf32, #tpu.memory_space<smem>>
    %c3_136 = arith.constant 3 : index
    %c3_137 = arith.constant 3 : index
    %75 = memref.load %arg4[%c3_136, %c3_137] : memref<4x6xf32, #tpu.memory_space<smem>>
    %c3_138 = arith.constant 3 : index
    %c4_139 = arith.constant 4 : index
    %76 = memref.load %arg4[%c3_138, %c4_139] : memref<4x6xf32, #tpu.memory_space<smem>>
    %c3_140 = arith.constant 3 : index
    %c5_141 = arith.constant 5 : index
    %77 = memref.load %arg4[%c3_140, %c5_141] : memref<4x6xf32, #tpu.memory_space<smem>>
    %c0_142 = arith.constant 0 : index
    %78 = memref.load %arg5[%c0_142] : memref<4xf32, #tpu.memory_space<smem>>
    %c1_143 = arith.constant 1 : index
    %79 = memref.load %arg5[%c1_143] : memref<4xf32, #tpu.memory_space<smem>>
    %c2_144 = arith.constant 2 : index
    %80 = memref.load %arg5[%c2_144] : memref<4xf32, #tpu.memory_space<smem>>
    %c3_145 = arith.constant 3 : index
    %81 = memref.load %arg5[%c3_145] : memref<4xf32, #tpu.memory_space<smem>>
    %c0_146 = arith.constant 0 : index
    %c0_147 = arith.constant 0 : index
    %82 = memref.load %arg6[%c0_146, %c0_147] : memref<1x4xf32, #tpu.memory_space<smem>>
    %c0_148 = arith.constant 0 : index
    %c1_149 = arith.constant 1 : index
    %83 = memref.load %arg6[%c0_148, %c1_149] : memref<1x4xf32, #tpu.memory_space<smem>>
    %c0_150 = arith.constant 0 : index
    %c2_151 = arith.constant 2 : index
    %84 = memref.load %arg6[%c0_150, %c2_151] : memref<1x4xf32, #tpu.memory_space<smem>>
    %c0_152 = arith.constant 0 : index
    %c3_153 = arith.constant 3 : index
    %85 = memref.load %arg6[%c0_152, %c3_153] : memref<1x4xf32, #tpu.memory_space<smem>>
    %c0_154 = arith.constant 0 : index
    %86 = memref.load %arg7[%c0_154] : memref<1xf32, #tpu.memory_space<smem>>
    %c0_i32 = arith.constant 0 : i32
    %c1_i32 = arith.constant 1 : i32
    %87 = arith.muli %c0_i32, %c1_i32 : i32
    %c0_i32_155 = arith.constant 0 : i32
    %88 = arith.addi %c0_i32_155, %87 : i32
    %c16_i32 = arith.constant 16 : i32
    %89 = arith.muli %88, %c16_i32 : i32
    %90 = tpu.assume_multiple %89, 16 : i32
    %c0_156 = arith.constant 0 : index
    %91 = arith.index_cast %90 : i32 to index
    %c0_157 = arith.constant 0 : index
    %92 = vector.load %arg1[%c0_156, %91, %c0_157] : memref<8x16x128xf32, #tpu.memory_space<vmem>>, vector<1x16x128xf32>
    %93 = vector.shape_cast %92 : vector<1x16x128xf32> to vector<16x128xf32>
    %c1_158 = arith.constant 1 : index
    %94 = arith.index_cast %90 : i32 to index
    %c0_159 = arith.constant 0 : index
    %95 = vector.load %arg1[%c1_158, %94, %c0_159] : memref<8x16x128xf32, #tpu.memory_space<vmem>>, vector<1x16x128xf32>
    %96 = vector.shape_cast %95 : vector<1x16x128xf32> to vector<16x128xf32>
    %c2_160 = arith.constant 2 : index
    %97 = arith.index_cast %90 : i32 to index
    %c0_161 = arith.constant 0 : index
    %98 = vector.load %arg1[%c2_160, %97, %c0_161] : memref<8x16x128xf32, #tpu.memory_space<vmem>>, vector<1x16x128xf32>
    %99 = vector.shape_cast %98 : vector<1x16x128xf32> to vector<16x128xf32>
    %c3_162 = arith.constant 3 : index
    %100 = arith.index_cast %90 : i32 to index
    %c0_163 = arith.constant 0 : index
    %101 = vector.load %arg1[%c3_162, %100, %c0_163] : memref<8x16x128xf32, #tpu.memory_space<vmem>>, vector<1x16x128xf32>
    %102 = vector.shape_cast %101 : vector<1x16x128xf32> to vector<16x128xf32>
    %c4_164 = arith.constant 4 : index
    %103 = arith.index_cast %90 : i32 to index
    %c0_165 = arith.constant 0 : index
    %104 = vector.load %arg1[%c4_164, %103, %c0_165] : memref<8x16x128xf32, #tpu.memory_space<vmem>>, vector<1x16x128xf32>
    %105 = vector.shape_cast %104 : vector<1x16x128xf32> to vector<16x128xf32>
    %c5_166 = arith.constant 5 : index
    %106 = arith.index_cast %90 : i32 to index
    %c0_167 = arith.constant 0 : index
    %107 = vector.load %arg1[%c5_166, %106, %c0_167] : memref<8x16x128xf32, #tpu.memory_space<vmem>>, vector<1x16x128xf32>
    %108 = vector.shape_cast %107 : vector<1x16x128xf32> to vector<16x128xf32>
    %c6_168 = arith.constant 6 : index
    %109 = arith.index_cast %90 : i32 to index
    %c0_169 = arith.constant 0 : index
    %110 = vector.load %arg1[%c6_168, %109, %c0_169] : memref<8x16x128xf32, #tpu.memory_space<vmem>>, vector<1x16x128xf32>
    %111 = vector.shape_cast %110 : vector<1x16x128xf32> to vector<16x128xf32>
    %c7_170 = arith.constant 7 : index
    %112 = arith.index_cast %90 : i32 to index
    %c0_171 = arith.constant 0 : index
    %113 = vector.load %arg1[%c7_170, %112, %c0_171] : memref<8x16x128xf32, #tpu.memory_space<vmem>>, vector<1x16x128xf32>
    %114 = vector.shape_cast %113 : vector<1x16x128xf32> to vector<16x128xf32>
    %115 = vector.broadcast %0 : f32 to vector<16x128xf32>
    %116 = arith.mulf %93, %115 : vector<16x128xf32>
    %117 = vector.broadcast %1 : f32 to vector<16x128xf32>
    %118 = arith.mulf %96, %117 : vector<16x128xf32>
    %119 = arith.addf %116, %118 : vector<16x128xf32>
    %120 = vector.broadcast %2 : f32 to vector<16x128xf32>
    %121 = arith.mulf %99, %120 : vector<16x128xf32>
    %122 = arith.addf %119, %121 : vector<16x128xf32>
    %123 = vector.broadcast %3 : f32 to vector<16x128xf32>
    %124 = arith.mulf %102, %123 : vector<16x128xf32>
    %125 = arith.addf %122, %124 : vector<16x128xf32>
    %126 = vector.broadcast %4 : f32 to vector<16x128xf32>
    %127 = arith.mulf %105, %126 : vector<16x128xf32>
    %128 = arith.addf %125, %127 : vector<16x128xf32>
    %129 = vector.broadcast %5 : f32 to vector<16x128xf32>
    %130 = arith.mulf %108, %129 : vector<16x128xf32>
    %131 = arith.addf %128, %130 : vector<16x128xf32>
    %132 = vector.broadcast %6 : f32 to vector<16x128xf32>
    %133 = arith.mulf %111, %132 : vector<16x128xf32>
    %134 = arith.addf %131, %133 : vector<16x128xf32>
    %135 = vector.broadcast %7 : f32 to vector<16x128xf32>
    %136 = arith.mulf %114, %135 : vector<16x128xf32>
    %137 = arith.addf %134, %136 : vector<16x128xf32>
    %138 = vector.broadcast %48 : f32 to vector<16x128xf32>
    %139 = arith.addf %137, %138 : vector<16x128xf32>
    %cst = arith.constant 5.000000e-01 : f32
    %140 = vector.broadcast %cst : f32 to vector<16x128xf32>
    %141 = arith.mulf %140, %139 : vector<16x128xf32>
    %142 = math.tanh %141 : vector<16x128xf32>
    %cst_172 = arith.constant 5.000000e-01 : f32
    %143 = vector.broadcast %cst_172 : f32 to vector<16x128xf32>
    %144 = arith.mulf %143, %142 : vector<16x128xf32>
    %cst_173 = arith.constant 5.000000e-01 : f32
    %145 = vector.broadcast %cst_173 : f32 to vector<16x128xf32>
    %146 = arith.addf %144, %145 : vector<16x128xf32>
    %147 = vector.broadcast %8 : f32 to vector<16x128xf32>
    %148 = arith.mulf %93, %147 : vector<16x128xf32>
    %149 = vector.broadcast %9 : f32 to vector<16x128xf32>
    %150 = arith.mulf %96, %149 : vector<16x128xf32>
    %151 = arith.addf %148, %150 : vector<16x128xf32>
    %152 = vector.broadcast %10 : f32 to vector<16x128xf32>
    %153 = arith.mulf %99, %152 : vector<16x128xf32>
    %154 = arith.addf %151, %153 : vector<16x128xf32>
    %155 = vector.broadcast %11 : f32 to vector<16x128xf32>
    %156 = arith.mulf %102, %155 : vector<16x128xf32>
    %157 = arith.addf %154, %156 : vector<16x128xf32>
    %158 = vector.broadcast %12 : f32 to vector<16x128xf32>
    %159 = arith.mulf %105, %158 : vector<16x128xf32>
    %160 = arith.addf %157, %159 : vector<16x128xf32>
    %161 = vector.broadcast %13 : f32 to vector<16x128xf32>
    %162 = arith.mulf %108, %161 : vector<16x128xf32>
    %163 = arith.addf %160, %162 : vector<16x128xf32>
    %164 = vector.broadcast %14 : f32 to vector<16x128xf32>
    %165 = arith.mulf %111, %164 : vector<16x128xf32>
    %166 = arith.addf %163, %165 : vector<16x128xf32>
    %167 = vector.broadcast %15 : f32 to vector<16x128xf32>
    %168 = arith.mulf %114, %167 : vector<16x128xf32>
    %169 = arith.addf %166, %168 : vector<16x128xf32>
    %170 = vector.broadcast %49 : f32 to vector<16x128xf32>
    %171 = arith.addf %169, %170 : vector<16x128xf32>
    %cst_174 = arith.constant 5.000000e-01 : f32
    %172 = vector.broadcast %cst_174 : f32 to vector<16x128xf32>
    %173 = arith.mulf %172, %171 : vector<16x128xf32>
    %174 = math.tanh %173 : vector<16x128xf32>
    %cst_175 = arith.constant 5.000000e-01 : f32
    %175 = vector.broadcast %cst_175 : f32 to vector<16x128xf32>
    %176 = arith.mulf %175, %174 : vector<16x128xf32>
    %cst_176 = arith.constant 5.000000e-01 : f32
    %177 = vector.broadcast %cst_176 : f32 to vector<16x128xf32>
    %178 = arith.addf %176, %177 : vector<16x128xf32>
    %179 = vector.broadcast %16 : f32 to vector<16x128xf32>
    %180 = arith.mulf %93, %179 : vector<16x128xf32>
    %181 = vector.broadcast %17 : f32 to vector<16x128xf32>
    %182 = arith.mulf %96, %181 : vector<16x128xf32>
    %183 = arith.addf %180, %182 : vector<16x128xf32>
    %184 = vector.broadcast %18 : f32 to vector<16x128xf32>
    %185 = arith.mulf %99, %184 : vector<16x128xf32>
    %186 = arith.addf %183, %185 : vector<16x128xf32>
    %187 = vector.broadcast %19 : f32 to vector<16x128xf32>
    %188 = arith.mulf %102, %187 : vector<16x128xf32>
    %189 = arith.addf %186, %188 : vector<16x128xf32>
    %190 = vector.broadcast %20 : f32 to vector<16x128xf32>
    %191 = arith.mulf %105, %190 : vector<16x128xf32>
    %192 = arith.addf %189, %191 : vector<16x128xf32>
    %193 = vector.broadcast %21 : f32 to vector<16x128xf32>
    %194 = arith.mulf %108, %193 : vector<16x128xf32>
    %195 = arith.addf %192, %194 : vector<16x128xf32>
    %196 = vector.broadcast %22 : f32 to vector<16x128xf32>
    %197 = arith.mulf %111, %196 : vector<16x128xf32>
    %198 = arith.addf %195, %197 : vector<16x128xf32>
    %199 = vector.broadcast %23 : f32 to vector<16x128xf32>
    %200 = arith.mulf %114, %199 : vector<16x128xf32>
    %201 = arith.addf %198, %200 : vector<16x128xf32>
    %202 = vector.broadcast %50 : f32 to vector<16x128xf32>
    %203 = arith.addf %201, %202 : vector<16x128xf32>
    %cst_177 = arith.constant 5.000000e-01 : f32
    %204 = vector.broadcast %cst_177 : f32 to vector<16x128xf32>
    %205 = arith.mulf %204, %203 : vector<16x128xf32>
    %206 = math.tanh %205 : vector<16x128xf32>
    %cst_178 = arith.constant 5.000000e-01 : f32
    %207 = vector.broadcast %cst_178 : f32 to vector<16x128xf32>
    %208 = arith.mulf %207, %206 : vector<16x128xf32>
    %cst_179 = arith.constant 5.000000e-01 : f32
    %209 = vector.broadcast %cst_179 : f32 to vector<16x128xf32>
    %210 = arith.addf %208, %209 : vector<16x128xf32>
    %211 = vector.broadcast %24 : f32 to vector<16x128xf32>
    %212 = arith.mulf %93, %211 : vector<16x128xf32>
    %213 = vector.broadcast %25 : f32 to vector<16x128xf32>
    %214 = arith.mulf %96, %213 : vector<16x128xf32>
    %215 = arith.addf %212, %214 : vector<16x128xf32>
    %216 = vector.broadcast %26 : f32 to vector<16x128xf32>
    %217 = arith.mulf %99, %216 : vector<16x128xf32>
    %218 = arith.addf %215, %217 : vector<16x128xf32>
    %219 = vector.broadcast %27 : f32 to vector<16x128xf32>
    %220 = arith.mulf %102, %219 : vector<16x128xf32>
    %221 = arith.addf %218, %220 : vector<16x128xf32>
    %222 = vector.broadcast %28 : f32 to vector<16x128xf32>
    %223 = arith.mulf %105, %222 : vector<16x128xf32>
    %224 = arith.addf %221, %223 : vector<16x128xf32>
    %225 = vector.broadcast %29 : f32 to vector<16x128xf32>
    %226 = arith.mulf %108, %225 : vector<16x128xf32>
    %227 = arith.addf %224, %226 : vector<16x128xf32>
    %228 = vector.broadcast %30 : f32 to vector<16x128xf32>
    %229 = arith.mulf %111, %228 : vector<16x128xf32>
    %230 = arith.addf %227, %229 : vector<16x128xf32>
    %231 = vector.broadcast %31 : f32 to vector<16x128xf32>
    %232 = arith.mulf %114, %231 : vector<16x128xf32>
    %233 = arith.addf %230, %232 : vector<16x128xf32>
    %234 = vector.broadcast %51 : f32 to vector<16x128xf32>
    %235 = arith.addf %233, %234 : vector<16x128xf32>
    %cst_180 = arith.constant 5.000000e-01 : f32
    %236 = vector.broadcast %cst_180 : f32 to vector<16x128xf32>
    %237 = arith.mulf %236, %235 : vector<16x128xf32>
    %238 = math.tanh %237 : vector<16x128xf32>
    %cst_181 = arith.constant 5.000000e-01 : f32
    %239 = vector.broadcast %cst_181 : f32 to vector<16x128xf32>
    %240 = arith.mulf %239, %238 : vector<16x128xf32>
    %cst_182 = arith.constant 5.000000e-01 : f32
    %241 = vector.broadcast %cst_182 : f32 to vector<16x128xf32>
    %242 = arith.addf %240, %241 : vector<16x128xf32>
    %243 = vector.broadcast %32 : f32 to vector<16x128xf32>
    %244 = arith.mulf %93, %243 : vector<16x128xf32>
    %245 = vector.broadcast %33 : f32 to vector<16x128xf32>
    %246 = arith.mulf %96, %245 : vector<16x128xf32>
    %247 = arith.addf %244, %246 : vector<16x128xf32>
    %248 = vector.broadcast %34 : f32 to vector<16x128xf32>
    %249 = arith.mulf %99, %248 : vector<16x128xf32>
    %250 = arith.addf %247, %249 : vector<16x128xf32>
    %251 = vector.broadcast %35 : f32 to vector<16x128xf32>
    %252 = arith.mulf %102, %251 : vector<16x128xf32>
    %253 = arith.addf %250, %252 : vector<16x128xf32>
    %254 = vector.broadcast %36 : f32 to vector<16x128xf32>
    %255 = arith.mulf %105, %254 : vector<16x128xf32>
    %256 = arith.addf %253, %255 : vector<16x128xf32>
    %257 = vector.broadcast %37 : f32 to vector<16x128xf32>
    %258 = arith.mulf %108, %257 : vector<16x128xf32>
    %259 = arith.addf %256, %258 : vector<16x128xf32>
    %260 = vector.broadcast %38 : f32 to vector<16x128xf32>
    %261 = arith.mulf %111, %260 : vector<16x128xf32>
    %262 = arith.addf %259, %261 : vector<16x128xf32>
    %263 = vector.broadcast %39 : f32 to vector<16x128xf32>
    %264 = arith.mulf %114, %263 : vector<16x128xf32>
    %265 = arith.addf %262, %264 : vector<16x128xf32>
    %266 = vector.broadcast %52 : f32 to vector<16x128xf32>
    %267 = arith.addf %265, %266 : vector<16x128xf32>
    %cst_183 = arith.constant 5.000000e-01 : f32
    %268 = vector.broadcast %cst_183 : f32 to vector<16x128xf32>
    %269 = arith.mulf %268, %267 : vector<16x128xf32>
    %270 = math.tanh %269 : vector<16x128xf32>
    %cst_184 = arith.constant 5.000000e-01 : f32
    %271 = vector.broadcast %cst_184 : f32 to vector<16x128xf32>
    %272 = arith.mulf %271, %270 : vector<16x128xf32>
    %cst_185 = arith.constant 5.000000e-01 : f32
    %273 = vector.broadcast %cst_185 : f32 to vector<16x128xf32>
    %274 = arith.addf %272, %273 : vector<16x128xf32>
    %275 = vector.broadcast %40 : f32 to vector<16x128xf32>
    %276 = arith.mulf %93, %275 : vector<16x128xf32>
    %277 = vector.broadcast %41 : f32 to vector<16x128xf32>
    %278 = arith.mulf %96, %277 : vector<16x128xf32>
    %279 = arith.addf %276, %278 : vector<16x128xf32>
    %280 = vector.broadcast %42 : f32 to vector<16x128xf32>
    %281 = arith.mulf %99, %280 : vector<16x128xf32>
    %282 = arith.addf %279, %281 : vector<16x128xf32>
    %283 = vector.broadcast %43 : f32 to vector<16x128xf32>
    %284 = arith.mulf %102, %283 : vector<16x128xf32>
    %285 = arith.addf %282, %284 : vector<16x128xf32>
    %286 = vector.broadcast %44 : f32 to vector<16x128xf32>
    %287 = arith.mulf %105, %286 : vector<16x128xf32>
    %288 = arith.addf %285, %287 : vector<16x128xf32>
    %289 = vector.broadcast %45 : f32 to vector<16x128xf32>
    %290 = arith.mulf %108, %289 : vector<16x128xf32>
    %291 = arith.addf %288, %290 : vector<16x128xf32>
    %292 = vector.broadcast %46 : f32 to vector<16x128xf32>
    %293 = arith.mulf %111, %292 : vector<16x128xf32>
    %294 = arith.addf %291, %293 : vector<16x128xf32>
    %295 = vector.broadcast %47 : f32 to vector<16x128xf32>
    %296 = arith.mulf %114, %295 : vector<16x128xf32>
    %297 = arith.addf %294, %296 : vector<16x128xf32>
    %298 = vector.broadcast %53 : f32 to vector<16x128xf32>
    %299 = arith.addf %297, %298 : vector<16x128xf32>
    %cst_186 = arith.constant 5.000000e-01 : f32
    %300 = vector.broadcast %cst_186 : f32 to vector<16x128xf32>
    %301 = arith.mulf %300, %299 : vector<16x128xf32>
    %302 = math.tanh %301 : vector<16x128xf32>
    %cst_187 = arith.constant 5.000000e-01 : f32
    %303 = vector.broadcast %cst_187 : f32 to vector<16x128xf32>
    %304 = arith.mulf %303, %302 : vector<16x128xf32>
    %cst_188 = arith.constant 5.000000e-01 : f32
    %305 = vector.broadcast %cst_188 : f32 to vector<16x128xf32>
    %306 = arith.addf %304, %305 : vector<16x128xf32>
    %307 = vector.broadcast %54 : f32 to vector<16x128xf32>
    %308 = arith.mulf %146, %307 : vector<16x128xf32>
    %309 = vector.broadcast %55 : f32 to vector<16x128xf32>
    %310 = arith.mulf %178, %309 : vector<16x128xf32>
    %311 = arith.addf %308, %310 : vector<16x128xf32>
    %312 = vector.broadcast %56 : f32 to vector<16x128xf32>
    %313 = arith.mulf %210, %312 : vector<16x128xf32>
    %314 = arith.addf %311, %313 : vector<16x128xf32>
    %315 = vector.broadcast %57 : f32 to vector<16x128xf32>
    %316 = arith.mulf %242, %315 : vector<16x128xf32>
    %317 = arith.addf %314, %316 : vector<16x128xf32>
    %318 = vector.broadcast %58 : f32 to vector<16x128xf32>
    %319 = arith.mulf %274, %318 : vector<16x128xf32>
    %320 = arith.addf %317, %319 : vector<16x128xf32>
    %321 = vector.broadcast %59 : f32 to vector<16x128xf32>
    %322 = arith.mulf %306, %321 : vector<16x128xf32>
    %323 = arith.addf %320, %322 : vector<16x128xf32>
    %324 = vector.broadcast %78 : f32 to vector<16x128xf32>
    %325 = arith.addf %323, %324 : vector<16x128xf32>
    %cst_189 = arith.constant 5.000000e-01 : f32
    %326 = vector.broadcast %cst_189 : f32 to vector<16x128xf32>
    %327 = arith.mulf %326, %325 : vector<16x128xf32>
    %328 = math.tanh %327 : vector<16x128xf32>
    %cst_190 = arith.constant 5.000000e-01 : f32
    %329 = vector.broadcast %cst_190 : f32 to vector<16x128xf32>
    %330 = arith.mulf %329, %328 : vector<16x128xf32>
    %cst_191 = arith.constant 5.000000e-01 : f32
    %331 = vector.broadcast %cst_191 : f32 to vector<16x128xf32>
    %332 = arith.addf %330, %331 : vector<16x128xf32>
    %333 = vector.broadcast %60 : f32 to vector<16x128xf32>
    %334 = arith.mulf %146, %333 : vector<16x128xf32>
    %335 = vector.broadcast %61 : f32 to vector<16x128xf32>
    %336 = arith.mulf %178, %335 : vector<16x128xf32>
    %337 = arith.addf %334, %336 : vector<16x128xf32>
    %338 = vector.broadcast %62 : f32 to vector<16x128xf32>
    %339 = arith.mulf %210, %338 : vector<16x128xf32>
    %340 = arith.addf %337, %339 : vector<16x128xf32>
    %341 = vector.broadcast %63 : f32 to vector<16x128xf32>
    %342 = arith.mulf %242, %341 : vector<16x128xf32>
    %343 = arith.addf %340, %342 : vector<16x128xf32>
    %344 = vector.broadcast %64 : f32 to vector<16x128xf32>
    %345 = arith.mulf %274, %344 : vector<16x128xf32>
    %346 = arith.addf %343, %345 : vector<16x128xf32>
    %347 = vector.broadcast %65 : f32 to vector<16x128xf32>
    %348 = arith.mulf %306, %347 : vector<16x128xf32>
    %349 = arith.addf %346, %348 : vector<16x128xf32>
    %350 = vector.broadcast %79 : f32 to vector<16x128xf32>
    %351 = arith.addf %349, %350 : vector<16x128xf32>
    %cst_192 = arith.constant 5.000000e-01 : f32
    %352 = vector.broadcast %cst_192 : f32 to vector<16x128xf32>
    %353 = arith.mulf %352, %351 : vector<16x128xf32>
    %354 = math.tanh %353 : vector<16x128xf32>
    %cst_193 = arith.constant 5.000000e-01 : f32
    %355 = vector.broadcast %cst_193 : f32 to vector<16x128xf32>
    %356 = arith.mulf %355, %354 : vector<16x128xf32>
    %cst_194 = arith.constant 5.000000e-01 : f32
    %357 = vector.broadcast %cst_194 : f32 to vector<16x128xf32>
    %358 = arith.addf %356, %357 : vector<16x128xf32>
    %359 = vector.broadcast %66 : f32 to vector<16x128xf32>
    %360 = arith.mulf %146, %359 : vector<16x128xf32>
    %361 = vector.broadcast %67 : f32 to vector<16x128xf32>
    %362 = arith.mulf %178, %361 : vector<16x128xf32>
    %363 = arith.addf %360, %362 : vector<16x128xf32>
    %364 = vector.broadcast %68 : f32 to vector<16x128xf32>
    %365 = arith.mulf %210, %364 : vector<16x128xf32>
    %366 = arith.addf %363, %365 : vector<16x128xf32>
    %367 = vector.broadcast %69 : f32 to vector<16x128xf32>
    %368 = arith.mulf %242, %367 : vector<16x128xf32>
    %369 = arith.addf %366, %368 : vector<16x128xf32>
    %370 = vector.broadcast %70 : f32 to vector<16x128xf32>
    %371 = arith.mulf %274, %370 : vector<16x128xf32>
    %372 = arith.addf %369, %371 : vector<16x128xf32>
    %373 = vector.broadcast %71 : f32 to vector<16x128xf32>
    %374 = arith.mulf %306, %373 : vector<16x128xf32>
    %375 = arith.addf %372, %374 : vector<16x128xf32>
    %376 = vector.broadcast %80 : f32 to vector<16x128xf32>
    %377 = arith.addf %375, %376 : vector<16x128xf32>
    %cst_195 = arith.constant 5.000000e-01 : f32
    %378 = vector.broadcast %cst_195 : f32 to vector<16x128xf32>
    %379 = arith.mulf %378, %377 : vector<16x128xf32>
    %380 = math.tanh %379 : vector<16x128xf32>
    %cst_196 = arith.constant 5.000000e-01 : f32
    %381 = vector.broadcast %cst_196 : f32 to vector<16x128xf32>
    %382 = arith.mulf %381, %380 : vector<16x128xf32>
    %cst_197 = arith.constant 5.000000e-01 : f32
    %383 = vector.broadcast %cst_197 : f32 to vector<16x128xf32>
    %384 = arith.addf %382, %383 : vector<16x128xf32>
    %385 = vector.broadcast %72 : f32 to vector<16x128xf32>
    %386 = arith.mulf %146, %385 : vector<16x128xf32>
    %387 = vector.broadcast %73 : f32 to vector<16x128xf32>
    %388 = arith.mulf %178, %387 : vector<16x128xf32>
    %389 = arith.addf %386, %388 : vector<16x128xf32>
    %390 = vector.broadcast %74 : f32 to vector<16x128xf32>
    %391 = arith.mulf %210, %390 : vector<16x128xf32>
    %392 = arith.addf %389, %391 : vector<16x128xf32>
    %393 = vector.broadcast %75 : f32 to vector<16x128xf32>
    %394 = arith.mulf %242, %393 : vector<16x128xf32>
    %395 = arith.addf %392, %394 : vector<16x128xf32>
    %396 = vector.broadcast %76 : f32 to vector<16x128xf32>
    %397 = arith.mulf %274, %396 : vector<16x128xf32>
    %398 = arith.addf %395, %397 : vector<16x128xf32>
    %399 = vector.broadcast %77 : f32 to vector<16x128xf32>
    %400 = arith.mulf %306, %399 : vector<16x128xf32>
    %401 = arith.addf %398, %400 : vector<16x128xf32>
    %402 = vector.broadcast %81 : f32 to vector<16x128xf32>
    %403 = arith.addf %401, %402 : vector<16x128xf32>
    %cst_198 = arith.constant 5.000000e-01 : f32
    %404 = vector.broadcast %cst_198 : f32 to vector<16x128xf32>
    %405 = arith.mulf %404, %403 : vector<16x128xf32>
    %406 = math.tanh %405 : vector<16x128xf32>
    %cst_199 = arith.constant 5.000000e-01 : f32
    %407 = vector.broadcast %cst_199 : f32 to vector<16x128xf32>
    %408 = arith.mulf %407, %406 : vector<16x128xf32>
    %cst_200 = arith.constant 5.000000e-01 : f32
    %409 = vector.broadcast %cst_200 : f32 to vector<16x128xf32>
    %410 = arith.addf %408, %409 : vector<16x128xf32>
    %411 = vector.broadcast %82 : f32 to vector<16x128xf32>
    %412 = arith.mulf %332, %411 : vector<16x128xf32>
    %413 = vector.broadcast %83 : f32 to vector<16x128xf32>
    %414 = arith.mulf %358, %413 : vector<16x128xf32>
    %415 = arith.addf %412, %414 : vector<16x128xf32>
    %416 = vector.broadcast %84 : f32 to vector<16x128xf32>
    %417 = arith.mulf %384, %416 : vector<16x128xf32>
    %418 = arith.addf %415, %417 : vector<16x128xf32>
    %419 = vector.broadcast %85 : f32 to vector<16x128xf32>
    %420 = arith.mulf %410, %419 : vector<16x128xf32>
    %421 = arith.addf %418, %420 : vector<16x128xf32>
    %422 = vector.broadcast %86 : f32 to vector<16x128xf32>
    %423 = arith.addf %421, %422 : vector<16x128xf32>
    %cst_201 = arith.constant 5.000000e-01 : f32
    %424 = vector.broadcast %cst_201 : f32 to vector<16x128xf32>
    %425 = arith.mulf %424, %423 : vector<16x128xf32>
    %426 = math.tanh %425 : vector<16x128xf32>
    %cst_202 = arith.constant 5.000000e-01 : f32
    %427 = vector.broadcast %cst_202 : f32 to vector<16x128xf32>
    %428 = arith.mulf %427, %426 : vector<16x128xf32>
    %cst_203 = arith.constant 5.000000e-01 : f32
    %429 = vector.broadcast %cst_203 : f32 to vector<16x128xf32>
    %430 = arith.addf %428, %429 : vector<16x128xf32>
    %431 = arith.index_cast %90 : i32 to index
    %c0_204 = arith.constant 0 : index
    %432 = vector.load %arg8[%431, %c0_204] : memref<16x128xf32, #tpu.memory_space<vmem>>, vector<16x128xf32>
    tpu.vector_store %arg8[%431, %c0_204], %430 {strides = array<i32>} : memref<16x128xf32, #tpu.memory_space<vmem>>, vector<16x128xf32>,
    %c1_i32_205 = arith.constant 1 : i32
    return
  }
  func.func @transform_0(%arg0: i32) -> (i32, i32, i32) {
    %c0_i32 = arith.constant 0 : i32
    %c0_i32_0 = arith.constant 0 : i32
    %c0_i32_1 = arith.constant 0 : i32
    return %c0_i32, %arg0, %c0_i32_0 : i32, i32, i32
  }
  func.func @transform_1(%arg0: i32) -> (i32, i32) {
    %c0_i32 = arith.constant 0 : i32
    %c0_i32_0 = arith.constant 0 : i32
    %c0_i32_1 = arith.constant 0 : i32
    return %c0_i32, %c0_i32_0 : i32, i32
  }
  func.func @transform_2(%arg0: i32) -> i32 {
    %c0_i32 = arith.constant 0 : i32
    %c0_i32_0 = arith.constant 0 : i32
    return %c0_i32 : i32
  }
  func.func @transform_3(%arg0: i32) -> (i32, i32) {
    %c0_i32 = arith.constant 0 : i32
    %c0_i32_0 = arith.constant 0 : i32
    %c0_i32_1 = arith.constant 0 : i32
    return %c0_i32, %c0_i32_0 : i32, i32
  }
  func.func @transform_4(%arg0: i32) -> i32 {
    %c0_i32 = arith.constant 0 : i32
    %c0_i32_0 = arith.constant 0 : i32
    return %c0_i32 : i32
  }
  func.func @transform_5(%arg0: i32) -> (i32, i32) {
    %c0_i32 = arith.constant 0 : i32
    %c0_i32_0 = arith.constant 0 : i32
    %c0_i32_1 = arith.constant 0 : i32
    return %c0_i32, %c0_i32_0 : i32, i32
  }
  func.func @transform_6(%arg0: i32) -> i32 {
    %c0_i32 = arith.constant 0 : i32
    %c0_i32_0 = arith.constant 0 : i32
    return %c0_i32 : i32
  }
  func.func @transform_7(%arg0: i32) -> (i32, i32) {
    %c0_i32 = arith.constant 0 : i32
    %c0_i32_0 = arith.constant 0 : i32
    return %arg0, %c0_i32 : i32, i32
  }
}

</mosaic_0001>

<bundles_post_ra>
// kernel: mlp_forward.1
= control target key start
LH: loop header
LB: loop body
LE: loop exit
PB: predicated region body
PF: predicated region fallthrough
CT: control target
= control target key end

     0   :  { %13 = vsyncpa [#allocation4], 0  ;;  %s1493_s0 = inlined_call_operand.vmem [shape: f32[8,16,128], index: 0, kind: input, shape index: {}]   ;;  %s1494_s1 = inlined_call_operand.vmem [shape: f32[6,8], index: 1, kind: input, shape index: {}]   ;;  %s1495_s2 = inlined_call_operand.vmem [shape: f32[6], index: 2, kind: input, shape index: {}]   ;;  %s1496_s3 = inlined_call_operand.vmem [shape: f32[4,6], index: 3, kind: input, shape index: {}]   ;;  %s1497_s4 = inlined_call_operand.vmem [shape: f32[4], index: 4, kind: input, shape index: {}]   ;;  %s1498_s5 = inlined_call_operand.vmem [shape: f32[1,4], index: 5, kind: input, shape index: {}]   ;;  %s1499_s6 = inlined_call_operand.<no memory space> [shape: f32[1], index: 6, kind: input, shape index: {}]   ;;  %s1500_s7 = inlined_call_operand.vmem [shape: f32[16,128], index: 7, kind: output, shape index: {}]  }
   0x1   :  { %14 = vsyncpa [#allocation6], 0  ;;  %s34_s26 = sshll.u32 %s1495_s2, 4  ;;  %s35_s26 = int_to_ptr.vmem [resolvable:$true] %s34_s26 }
   0x2   :  { %15 = vsyncpa [#allocation9], 0  ;;  %s54_s29 = sshll.u32 %s1497_s4, 4  ;;  %s842_s30 = scalar_lea.vmem %s35_s26, 16  ;;  %s55_s29 = int_to_ptr.vmem [resolvable:$true] %s54_s29 }
   0x3   :  { %p843_p0 = scmp.ne.s32.totalorder %s35_s26, %s842_s30  ;;  %p847_p1 = scmp.lt.s32.totalorder %s35_s26, %s35_s26 }
   0x4   :  { %p848_p2 = scmp.lt.s32.totalorder %s842_s30, %s842_s30 }
   0x6   :  { %p849_p3 = por %p848_p2, %p847_p1 }
   0x8   :  { %p850_p4 = pnand %p849_p3, %p843_p0 }
   0xa   :  { %853 = shalt.err (!%p850_p4)
}
   0xb   :  { %s908_s8 = smov [#allocation5]   ;;  %s854_s9 = scalar_lea.vmem %s55_s29, 16 }
   0xc   :  { %37 = dma.vmem_to_smem %s35_s26, 16, %s908_s8, [#allocation6]  }
   0xd   :  { %p855_p5 = scmp.ne.s32.totalorder %s55_s29, %s854_s9  ;;  %p859_p6 = scmp.lt.s32.totalorder %s55_s29, %s55_s29 }
   0xe   :  { %p860_p7 = scmp.lt.s32.totalorder %s854_s9, %s854_s9 }
  0x10   :  { %p861_p8 = por %p860_p7, %p859_p6 }
  0x12   :  { %p862_p9 = pnand %p861_p8, %p855_p5 }
  0x14   :  { %865 = shalt.err (!%p862_p9)
}
  0x15   :  { %s909_s2 = smov [#allocation8]   ;;  %s24_s11 = sshll.u32 %s1494_s1, 4  ;;  %s25_s11 = int_to_ptr.vmem [resolvable:$true] %s24_s11 }
  0x16   :  { %57 = dma.vmem_to_smem %s55_s29, 16, %s909_s2, [#allocation9]  }
  0x17   :  { %s44_s14 = sshll.u32 %s1496_s3, 4  ;;  %s866_s15 = scalar_lea.vmem %s25_s11, 128  ;;  %s45_s14 = int_to_ptr.vmem [resolvable:$true] %s44_s14 }
  0x18   :  { %p867_p10 = scmp.ne.s32.totalorder %s25_s11, %s866_s15  ;;  %p871_p11 = scmp.lt.s32.totalorder %s25_s11, %s25_s11 }
  0x19   :  { %p872_p12 = scmp.lt.s32.totalorder %s866_s15, %s866_s15 }
  0x1b   :  { %p873_p13 = por %p872_p12, %p871_p11 }
  0x1d   :  { %p874_p0 = pnand %p873_p13, %p867_p10 }
  0x1f   :  { %877 = shalt.err (!%p874_p0)
}
  0x20   :  { %s910_s16 = smov [#allocation3]   ;;  %s878_s17 = scalar_lea.vmem %s45_s14, 64 }
  0x21   :  { %27 = dma.vmem_to_smem %s25_s11, 128, %s910_s16, [#allocation4]  }
  0x22   :  { %p879_p1 = scmp.ne.s32.totalorder %s45_s14, %s878_s17  ;;  %p883_p2 = scmp.lt.s32.totalorder %s45_s14, %s45_s14 }
  0x23   :  { %p884_p3 = scmp.lt.s32.totalorder %s878_s17, %s878_s17 }
  0x25   :  { %p885_p4 = por %p884_p3, %p883_p2 }
  0x27   :  { %p886_p5 = pnand %p885_p4, %p879_p1 }
  0x29   :  { %889 = shalt.err (!%p886_p5)
}
  0x2a   :  { %s911_s1 = smov [#allocation7]   ;;  %s64_s19 = sshll.u32 %s1498_s5, 4  ;;  %s65_s19 = int_to_ptr.vmem [resolvable:$true] %s64_s19 }
  0x2b   :  { %47 = dma.vmem_to_smem %s45_s14, 64, %s911_s1, [#allocation6]  }
  0x2c   :  { %s890_s20 = scalar_lea.vmem %s65_s19, 16  ;;  %p895_p7 = scmp.lt.s32.totalorder %s65_s19, %s65_s19 }
  0x2d   :  { %p891_p6 = scmp.ne.s32.totalorder %s65_s19, %s890_s20  ;;  %p896_p8 = scmp.lt.s32.totalorder %s890_s20, %s890_s20 }
  0x2f   :  { %p897_p9 = por %p896_p8, %p895_p7 }
  0x31   :  { %p898_p10 = pnand %p897_p9, %p891_p6 }
  0x33   :  { %901 = shalt.err (!%p898_p10)
}
  0x34   :  { %s912_s21 = smov [#allocation10]  }
  0x35   :  { %67 = dma.vmem_to_smem %s65_s19, 16, %s912_s21, [#allocation9]  }
  0x36   :  { %902 = dma.done.wait [#allocation4], 128  }
  0x37   :  { %903 = vsyncadd [#allocation4], 4294967168 }
  0x38   :  { %904 = dma.done.wait [#allocation6], 80  }
  0x39   :  { %905 = vsyncadd [#allocation6], 4294967216 }
  0x3a   :  { %906 = dma.done.wait [#allocation9], 32  }
  0x3b   :  { %907 = vsyncadd [#allocation9], 4294967264 }
  0x3c   :  { %85 = sfence }
  0x3d   :  { %s86_s22 = sld [smem:[#allocation3]]  ;;  %v975_v0 = vld [vmem:[%s1493_s0] sm:$0xff]  ;;  %v980_v1 = vld [vmem:[%s1493_s0 + $0x8] sm:$0xff]  ;;  %v987_v2 = vld [vmem:[%s1493_s0 + $0x10] sm:$0xff] }
  0x3e   :  { %s698_s23 = sld [smem:[#allocation3 + $0x1]]  ;;  %v992_v3 = vld [vmem:[%s1493_s0 + $0x18] sm:$0xff]  ;;  %v999_v4 = vld [vmem:[%s1493_s0 + $0x20] sm:$0xff]  ;;  %v1004_v5 = vld [vmem:[%s1493_s0 + $0x28] sm:$0xff] }
  0x3f   :  { %s699_s5 = sld [smem:[#allocation3 + $0x2]]  ;;  %v1011_v7 = vld [vmem:[%s1493_s0 + $0x30] sm:$0xff]  ;;  %v1016_v8 = vld [vmem:[%s1493_s0 + $0x38] sm:$0xff]  ;;  %v1029_v15 = vld [vmem:[%s1493_s0 + $0x40] sm:$0xff] }
  0x40   :  { %s968_s24 = sld [smem:[#allocation3 + $0x3]]  ;;  %v1034_v16 = vld [vmem:[%s1493_s0 + $0x48] sm:$0xff]  ;;  %v1044_v20 = vld [vmem:[%s1493_s0 + $0x50] sm:$0xff]  ;;  %v1049_v21 = vld [vmem:[%s1493_s0 + $0x58] sm:$0xff] }
  0x41   :  { %s970_s25 = sld [smem:[#allocation3 + $0x4]]  ;;  %v1058_v26 = vld [vmem:[%s1493_s0 + $0x60] sm:$0xff]  ;;  %v1063_v27 = vld [vmem:[%s1493_s0 + $0x68] sm:$0xff]  ;;  %v1072_v30 = vld [vmem:[%s1493_s0 + $0x70] sm:$0xff] }
  0x42   :  { %s982_s30 = sld [smem:[#allocation3 + $0x5]]  ;;  %v1077_v31 = vld [vmem:[%s1493_s0 + $0x78] sm:$0xff] }
  0x43   :  { %s994_s10 = sld [smem:[#allocation3 + $0x6]]  ;;  %v203_v6 = vstv %s86_s22 }
  0x44   :  { %s1006_s15 = sld [smem:[#allocation3 + $0x7]]  ;;  %v204_v9 = vmul.f32 %v203_v6, %v975_v0  ;;  %v205_v10 = vmul.f32 %v203_v6, %v980_v1  ;;  %v206_v11 = vstv %s698_s23 }
  0x45   :  { %s1020_s18 = sld [smem:[#allocation3 + $0x80]]  ;;  %v207_v12 = vmul.f32 %v987_v2, %v206_v11  ;;  %v208_v13 = vmul.f32 %v992_v3, %v206_v11  ;;  %v211_v14 = vstv %s699_s5 }
  0x46   :  { %s1024_s19 = sld [smem:[#allocation3 + $0x81]]  ;;  %v212_v17 = vmul.f32 %v999_v4, %v211_v14  ;;  %v213_v18 = vmul.f32 %v1004_v5, %v211_v14  ;;  %v216_v19 = vstv %s968_s24 }
  0x47   :  { %s1039_s23 = sld [smem:[#allocation3 + $0x82]]  ;;  %v209_v22 = vadd.f32 %v207_v12, %v204_v9  ;;  %v210_v23 = vadd.f32 %v208_v13, %v205_v10  ;;  %v217_v24 = vmul.f32 %v1011_v7, %v216_v19  ;;  %v218_v25 = vmul.f32 %v1016_v8, %v216_v19 }
  0x48   :  { %s1053_s24 = sld [smem:[#allocation3 + $0x83]]  ;;  %v221_v28 = vstv %s970_s25  ;;  %v226_v29 = vstv %s982_s30 }
  0x49   :  { %s1067_s11 = sld [smem:[#allocation3 + $0x84]]  ;;  %v214_v32 = vadd.f32 %v212_v17, %v209_v22  ;;  %v215_v33 = vadd.f32 %v213_v18, %v210_v23  ;;  %v222_v34 = vmul.f32 %v1029_v15, %v221_v28  ;;  %v223_v35 = vmul.f32 %v1034_v16, %v221_v28 }
  0x4a   :  { %s1081_s25 = sld [smem:[#allocation3 + $0x85]]  ;;  %v227_v36 = vmul.f32 %v1044_v20, %v226_v29  ;;  %v228_v37 = vmul.f32 %v1049_v21, %v226_v29  ;;  %v231_v38 = vstv %s994_s10  ;;  %v236_v39 = vstv %s1006_s15 }
  0x4b   :  { %s1087_s30 = sld [smem:[#allocation3 + $0x86]]  ;;  %v219_v40 = vadd.f32 %v217_v24, %v214_v32  ;;  %v220_v41 = vadd.f32 %v218_v25, %v215_v33  ;;  %v232_v42 = vmul.f32 %v1058_v26, %v231_v38  ;;  %v233_v43 = vmul.f32 %v1063_v27, %v231_v38 }
  0x4c   :  { %s1091_s0 = sld [smem:[#allocation3 + $0x87]]  ;;  %v237_v44 = vmul.f32 %v1072_v30, %v236_v39  ;;  %v238_v45 = vmul.f32 %v1077_v31, %v236_v39  ;;  %v252_v46 = vstv %s1020_s18  ;;  %v255_v47 = vstv %s1024_s19 }
  0x4d   :  { %s1097_s10 = sld [smem:[#allocation3 + $0x100]]  ;;  %v224_v48 = vadd.f32 %v222_v34, %v219_v40  ;;  %v225_v49 = vadd.f32 %v223_v35, %v220_v41  ;;  %v253_v50 = vmul.f32 %v252_v46, %v975_v0  ;;  %v254_v51 = vmul.f32 %v252_v46, %v980_v1 }
  0x4e   :  { %s1101_s15 = sld [smem:[#allocation3 + $0x101]]  ;;  %v256_v52 = vmul.f32 %v987_v2, %v255_v47  ;;  %v257_v53 = vmul.f32 %v992_v3, %v255_v47  ;;  %v260_v54 = vstv %s1039_s23  ;;  %v265_v55 = vstv %s1053_s24 }
  0x4f   :  { %s1107_s17 = sld [smem:[#allocation3 + $0x102]]  ;;  %v229_v56 = vadd.f32 %v227_v36, %v224_v48  ;;  %v230_v57 = vadd.f32 %v228_v37, %v225_v49  ;;  %v261_v58 = vmul.f32 %v999_v4, %v260_v54  ;;  %v262_v59 = vmul.f32 %v1004_v5, %v260_v54 }
  0x50   :  { %s1111_s1 = sld [smem:[#allocation3 + $0x103]]  ;;  %v258_v60 = vadd.f32 %v256_v52, %v253_v50  ;;  %v259_v61 = vadd.f32 %v257_v53, %v254_v51  ;;  %v266_v62 = vmul.f32 %v1011_v7, %v265_v55  ;;  %v267_v63 = vmul.f32 %v1016_v8, %v265_v55 }
  0x51   :  { %s1115_s3 = sld [smem:[#allocation3 + $0x104]]  ;;  %v234_v6 = vadd.f32 %v232_v42, %v229_v56  ;;  %v235_v9 = vadd.f32 %v233_v43, %v230_v57  ;;  %v270_v10 = vstv %s1067_s11  ;;  %v275_v11 = vstv %s1081_s25 }
  0x52   :  { %s1119_s18 = sld [smem:[#allocation3 + $0x105]]  ;;  %v263_v12 = vadd.f32 %v261_v58, %v258_v60  ;;  %v264_v13 = vadd.f32 %v262_v59, %v259_v61  ;;  %v271_v14 = vmul.f32 %v1029_v15, %v270_v10  ;;  %v272_v17 = vmul.f32 %v1034_v16, %v270_v10 }
  0x53   :  { %s1123_s19 = sld [smem:[#allocation3 + $0x106]]  ;;  %v1125_v18 = vadd.f32 %v237_v44, %v234_v6  ;;  %v1127_v19 = vadd.f32 %v238_v45, %v235_v9  ;;  %v276_v22 = vmul.f32 %v1044_v20, %v275_v11  ;;  %v277_v23 = vmul.f32 %v1049_v21, %v275_v11 }
  0x54   :  { %s1131_s20 = sld [smem:[#allocation3 + $0x107]]  ;;  %v268_v24 = vadd.f32 %v266_v62, %v263_v12  ;;  %v269_v25 = vadd.f32 %v267_v63, %v264_v13  ;;  %v280_v28 = vstv %s1087_s30  ;;  %v285_v29 = vstv %s1091_s0 }
  0x55   :  { %s1135_s21 = sld [smem:[#allocation3 + $0x180]]  ;;  %v281_v32 = vmul.f32 %v1058_v26, %v280_v28  ;;  %v282_v33 = vmul.f32 %v1063_v27, %v280_v28  ;;  %v286_v34 = vmul.f32 %v1072_v30, %v285_v29  ;;  %v287_v35 = vmul.f32 %v1077_v31, %v285_v29 }
  0x56   :  { %s1141_s22 = sld [smem:[#allocation3 + $0x181]]  ;;  %v273_v36 = vadd.f32 %v271_v14, %v268_v24  ;;  %v274_v37 = vadd.f32 %v272_v17, %v269_v25  ;;  %v301_v38 = vstv %s1097_s10  ;;  %v304_v39 = vstv %s1101_s15 }
  0x57   :  { %s1145_s26 = sld [smem:[#allocation3 + $0x182]]  ;;  %v302_v40 = vmul.f32 %v301_v38, %v975_v0  ;;  %v303_v41 = vmul.f32 %v301_v38, %v980_v1  ;;  %v305_v42 = vmul.f32 %v987_v2, %v304_v39  ;;  %v306_v43 = vmul.f32 %v992_v3, %v304_v39 }
  0x58   :  { %s1151_s23 = sld [smem:[#allocation3 + $0x183]]  ;;  %v278_v44 = vadd.f32 %v276_v22, %v273_v36  ;;  %v279_v45 = vadd.f32 %v277_v23, %v274_v37  ;;  %v309_v46 = vstv %s1107_s17  ;;  %v314_v47 = vstv %s1111_s1 }
  0x59   :  { %s1155_s5 = sld [smem:[#allocation3 + $0x184]]  ;;  %v307_v48 = vadd.f32 %v305_v42, %v302_v40  ;;  %v308_v49 = vadd.f32 %v306_v43, %v303_v41  ;;  %v310_v50 = vmul.f32 %v999_v4, %v309_v46  ;;  %v311_v51 = vmul.f32 %v1004_v5, %v309_v46 }
  0x5a   :  { %s1159_s27 = sld [smem:[#allocation3 + $0x185]]  ;;  %v283_v52 = vadd.f32 %v281_v32, %v278_v44  ;;  %v284_v53 = vadd.f32 %v282_v33, %v279_v45  ;;  %v315_v54 = vmul.f32 %v1011_v7, %v314_v47  ;;  %v316_v55 = vmul.f32 %v1016_v8, %v314_v47 }
  0x5b   :  { %v312_v56 = vadd.f32 %v310_v50, %v307_v48  ;;  %v313_v57 = vadd.f32 %v311_v51, %v308_v49  ;;  %v319_v58 = vstv %s1115_s3  ;;  %v324_v59 = vstv %s1119_s18  ;;  %s1165_s28 = sld [smem:[#allocation3 + $0x186]] }
  0x5c   :  { %v1167_v60 = vadd.f32 %v286_v34, %v283_v52  ;;  %v1169_v61 = vadd.f32 %v287_v35, %v284_v53  ;;  %v320_v62 = vmul.f32 %v1029_v15, %v319_v58  ;;  %v321_v63 = vmul.f32 %v1034_v16, %v319_v58  ;;  %s1173_s29 = sld [smem:[#allocation3 + $0x187]] }
  0x5d   :  { %v317_v6 = vadd.f32 %v315_v54, %v312_v56  ;;  %v318_v9 = vadd.f32 %v316_v55, %v313_v57  ;;  %v325_v10 = vmul.f32 %v1044_v20, %v324_v59  ;;  %v326_v11 = vmul.f32 %v1049_v21, %v324_v59  ;;  %s1177_s24 = sld [smem:[#allocation3 + $0x200]] }
  0x5e   :  { %v329_v12 = vstv %s1123_s19  ;;  %v334_v13 = vstv %s1131_s20  ;;  %v350_v14 = vstv %s1135_s21  ;;  %v353_v17 = vstv %s1141_s22  ;;  %s1183_s8 = sld [smem:[#allocation3 + $0x201]] }
  0x5f   :  { %v322_v22 = vadd.f32 %v320_v62, %v317_v6  ;;  %v323_v23 = vadd.f32 %v321_v63, %v318_v9  ;;  %v330_v24 = vmul.f32 %v1058_v26, %v329_v12  ;;  %v331_v25 = vmul.f32 %v1063_v27, %v329_v12  ;;  %s1187_s9 = sld [smem:[#allocation3 + $0x202]] }
  0x60   :  { %v335_v28 = vmul.f32 %v1072_v30, %v334_v13  ;;  %v336_v29 = vmul.f32 %v1077_v31, %v334_v13  ;;  %v351_v32 = vmul.f32 %v350_v14, %v975_v0  ;;  %v352_v33 = vmul.f32 %v350_v14, %v980_v1  ;;  %s1193_s2 = sld [smem:[#allocation3 + $0x203]] }
  0x61   :  { %v327_v34 = vadd.f32 %v325_v10, %v322_v22  ;;  %v328_v35 = vadd.f32 %v326_v11, %v323_v23  ;;  %v354_v36 = vmul.f32 %v987_v2, %v353_v17  ;;  %v355_v37 = vmul.f32 %v992_v3, %v353_v17  ;;  %s1197_s4 = sld [smem:[#allocation3 + $0x204]] }
  0x62   :  { %v358_v38 = vstv %s1145_s26  ;;  %v363_v39 = vstv %s1151_s23  ;;  %v368_v40 = vstv %s1155_s5  ;;  %v373_v41 = vstv %s1159_s27  ;;  %s1203_s11 = sld [smem:[#allocation3 + $0x205]] }
  0x63   :  { %v332_v42 = vadd.f32 %v330_v24, %v327_v34  ;;  %v333_v43 = vadd.f32 %v331_v25, %v328_v35  ;;  %v356_v44 = vadd.f32 %v354_v36, %v351_v32  ;;  %v357_v45 = vadd.f32 %v355_v37, %v352_v33  ;;  %s1217_s12 = sld [smem:[#allocation3 + $0x206]] }
  0x64   :  { %v359_v46 = vmul.f32 %v999_v4, %v358_v38  ;;  %v360_v47 = vmul.f32 %v1004_v5, %v358_v38  ;;  %v364_v48 = vmul.f32 %v1011_v7, %v363_v39  ;;  %v365_v49 = vmul.f32 %v1016_v8, %v363_v39  ;;  %s1223_s13 = sld [smem:[#allocation3 + $0x207]] }
  0x65   :  { %v1209_v50 = vadd.f32 %v335_v28, %v332_v42  ;;  %v1211_v51 = vadd.f32 %v336_v29, %v333_v43  ;;  %v369_v52 = vmul.f32 %v1029_v15, %v368_v40  ;;  %v370_v53 = vmul.f32 %v1034_v16, %v368_v40  ;;  %s1227_s14 = sld [smem:[#allocation3 + $0x280]] }
  0x66   :  { %v361_v54 = vadd.f32 %v359_v46, %v356_v44  ;;  %v362_v55 = vadd.f32 %v360_v47, %v357_v45  ;;  %v374_v56 = vmul.f32 %v1044_v20, %v373_v41  ;;  %v375_v57 = vmul.f32 %v1049_v21, %v373_v41  ;;  %s1233_s16 = sld [smem:[#allocation3 + $0x281]] }
  0x67   :  { %v378_v58 = vstv %s1165_s28  ;;  %v383_v59 = vstv %s1173_s29  ;;  %v399_v62 = vstv %s1177_s24  ;;  %v402_v63 = vstv %s1183_s8  ;;  %s1241_s25 = sld [smem:[#allocation5]] }
  0x68   :  { %v366_v6 = vadd.f32 %v364_v48, %v361_v54  ;;  %v367_v9 = vadd.f32 %v365_v49, %v362_v55  ;;  %v379_v10 = vmul.f32 %v1058_v26, %v378_v58  ;;  %v380_v11 = vmul.f32 %v1063_v27, %v378_v58  ;;  %s1247_s30 = sld [smem:[#allocation5 + $0x1]] }
  0x69   :  { %v384_v12 = vmul.f32 %v1072_v30, %v383_v59  ;;  %v385_v13 = vmul.f32 %v1077_v31, %v383_v59  ;;  %v400_v14 = vmul.f32 %v399_v62, %v975_v0  ;;  %v401_v17 = vmul.f32 %v399_v62, %v980_v1  ;;  %s1251_s0 = sld [smem:[#allocation5 + $0x2]] }
  0x6a   :  { %v371_v22 = vadd.f32 %v369_v52, %v366_v6  ;;  %v372_v23 = vadd.f32 %v370_v53, %v367_v9  ;;  %v403_v24 = vmul.f32 %v987_v2, %v402_v63  ;;  %v404_v25 = vmul.f32 %v992_v3, %v402_v63  ;;  %s1255_s10 = sld [smem:[#allocation5 + $0x3]] }
  0x6b   :  { %v407_v28 = vstv %s1187_s9  ;;  %v412_v29 = vstv %s1193_s2  ;;  %v417_v32 = vstv %s1197_s4  ;;  %v422_v33 = vstv %s1203_s11  ;;  %s1261_s15 = sld [smem:[#allocation5 + $0x4]] }
  0x6c   :  { %v376_v34 = vadd.f32 %v374_v56, %v371_v22  ;;  %v377_v35 = vadd.f32 %v375_v57, %v372_v23  ;;  %v405_v36 = vadd.f32 %v403_v24, %v400_v14  ;;  %v406_v37 = vadd.f32 %v404_v25, %v401_v17  ;;  %s1267_s17 = sld [smem:[#allocation3 + $0x282]] }
  0x6d   :  { %v408_v38 = vmul.f32 %v999_v4, %v407_v28  ;;  %v409_v39 = vmul.f32 %v1004_v5, %v407_v28  ;;  %v413_v40 = vmul.f32 %v1011_v7, %v412_v29  ;;  %v414_v41 = vmul.f32 %v1016_v8, %v412_v29  ;;  %s1271_s1 = sld [smem:[#allocation3 + $0x283]] }
  0x6e   :  { %v381_v42 = vadd.f32 %v379_v10, %v376_v34  ;;  %v382_v43 = vadd.f32 %v380_v11, %v377_v35  ;;  %v418_v44 = vmul.f32 %v1029_v15, %v417_v32  ;;  %v419_v45 = vmul.f32 %v1034_v16, %v417_v32  ;;  %s1277_s3 = sld [smem:[#allocation3 + $0x284]] }
  0x6f   :  { %v410_v46 = vadd.f32 %v408_v38, %v405_v36  ;;  %v411_v47 = vadd.f32 %v409_v39, %v406_v37  ;;  %v423_v48 = vmul.f32 %v1044_v20, %v422_v33  ;;  %v424_v49 = vmul.f32 %v1049_v21, %v422_v33  ;;  %s1282_s18 = sld [smem:[#allocation3 + $0x285]] }
  0x70   :  { %v386_v52 = vadd.f32 %v384_v12, %v381_v42  ;;  %v387_v53 = vadd.f32 %v385_v13, %v382_v43  ;;  %v427_v54 = vstv %s1217_s12  ;;  %v432_v55 = vstv %s1223_s13  ;;  %s1286_s19 = sld [smem:[#allocation3 + $0x286]] }
  0x71   :  { %v415_v56 = vadd.f32 %v413_v40, %v410_v46  ;;  %v416_v57 = vadd.f32 %v414_v41, %v411_v47  ;;  %v428_v58 = vmul.f32 %v1058_v26, %v427_v54  ;;  %v429_v59 = vmul.f32 %v1063_v27, %v427_v54  ;;  %s1289_s20 = sld [smem:[#allocation3 + $0x287]] }
  0x72   :  { %v433_v62 = vmul.f32 %v1072_v30, %v432_v55  ;;  %v434_v63 = vmul.f32 %v1077_v31, %v432_v55  ;;  %v448_v6 = vstv %s1227_s14  ;;  %v451_v9 = vstv %s1233_s16  ;;  %s1291_s21 = sld [smem:[#allocation5 + $0x5]] }
  0x73   :  { %v241_v10 = vstv %s1241_s25  ;;  %v420_v11 = vadd.f32 %v418_v44, %v415_v56  ;;  %v421_v12 = vadd.f32 %v419_v45, %v416_v57  ;;  %v449_v13 = vmul.f32 %v448_v6, %v975_v0  ;;  %s1293_s22 = sld [smem:[#allocation7]] }
  0x74   :  { %v242_v14 = vadd.f32 %v241_v10, %v1125_v18  ;;  %v243_v17 = vadd.f32 %v241_v10, %v1127_v19  ;;  %v290_v22 = vstv %s1247_s30  ;;  %v450_v23 = vmul.f32 %v448_v6, %v980_v1  ;;  %s1297_s26 = sld [smem:[#allocation7 + $0x1]] }
  0x75   :  { %v291_v24 = vadd.f32 %v290_v22, %v1167_v60  ;;  %v292_v25 = vadd.f32 %v290_v22, %v1169_v61  ;;  %v339_v28 = vstv %s1251_s0  ;;  %v425_v29 = vadd.f32 %v423_v48, %v420_v11  ;;  %s1299_s23 = sld [smem:[#allocation7 + $0x2]] }
  0x76   :  { %v244_v0 = vmul.f32 0.5, %v242_v14  ;;  %v245_v32 = vmul.f32 0.5, %v243_v17  ;;  %v340_v18 = vadd.f32 %v339_v28, %v1209_v50  ;;  %v341_v19 = vadd.f32 %v339_v28, %v1211_v51  ;;  %s1303_s5 = sld [smem:[#allocation7 + $0x3]] }
  0x77   :  { %v293_v33 = vmul.f32 0.5, %v291_v24  ;;  %v294_v1 = vmul.f32 0.5, %v292_v25  ;;  %v388_v34 = vstv %s1255_s10  ;;  %v426_v35 = vadd.f32 %v424_v49, %v421_v12  ;;  %s1306_s27 = sld [smem:[#allocation7 + $0x4]] }
  0x78   :  { %798 = vtanh.f32 %v244_v0  ;;  %v342_v60 = vmul.f32 0.5, %v340_v18  ;;  %v343_v61 = vmul.f32 0.5, %v341_v19  ;;  %v389_v36 = vadd.f32 %v388_v34, %v386_v52  ;;  %s1310_s28 = sld [smem:[#allocation7 + $0x5]] }
  0x79   :  { %800 = vtanh.f32 %v245_v32  ;;  %v390_v37 = vadd.f32 %v388_v34, %v387_v53  ;;  %v430_v50 = vadd.f32 %v428_v58, %v425_v29  ;;  %v431_v51 = vadd.f32 %v429_v59, %v426_v35  ;;  %s1312_s29 = sld [smem:[#allocation7 + $0x80]] }
  0x7a   :  { %802 = vtanh.f32 %v293_v33  ;;  %v391_v38 = vmul.f32 0.5, %v389_v36  ;;  %v437_v39 = vstv %s1261_s15  ;;  %v452_v40 = vmul.f32 %v987_v2, %v451_v9  ;;  %s1317_s24 = sld [smem:[#allocation7 + $0x81]] }
  0x7b   :  { %804 = vtanh.f32 %v294_v1  ;;  %v392_v41 = vmul.f32 0.5, %v390_v37  ;;  %v435_v42 = vadd.f32 %v433_v62, %v430_v50  ;;  %v436_v43 = vadd.f32 %v434_v63, %v431_v51  ;;  %s1339_s8 = sld [smem:[#allocation7 + $0x82]] }
  0x7c   :  { %806 = vtanh.f32 %v342_v60  ;;  %v453_v44 = vmul.f32 %v992_v3, %v451_v9  ;;  %v454_v45 = vadd.f32 %v452_v40, %v449_v13  ;;  %v456_v46 = vstv %s1267_s17  ;;  %s1345_s9 = sld [smem:[#allocation7 + $0x83]] }
  0x7d   :  { %808 = vtanh.f32 %v343_v61  ;;  %v438_v47 = vadd.f32 %v437_v39, %v435_v42  ;;  %v439_v48 = vadd.f32 %v437_v39, %v436_v43  ;;  %v457_v2 = vmul.f32 %v999_v4, %v456_v46  ;;  %s1349_s2 = sld [smem:[#allocation8]] }
  0x7e   :  { %810 = vtanh.f32 %v391_v38  ;;  %v455_v49 = vadd.f32 %v453_v44, %v450_v23  ;;  %v458_v52 = vmul.f32 %v1004_v5, %v456_v46  ;;  %v461_v53 = vstv %s1271_s1  ;;  %s1355_s4 = sld [smem:[#allocation7 + $0x84]] }
  0x7f   :  { %812 = vtanh.f32 %v392_v41  ;;  %v440_v3 = vmul.f32 0.5, %v438_v47  ;;  %v441_v54 = vmul.f32 0.5, %v439_v48  ;;  %v459_v55 = vadd.f32 %v457_v2, %v454_v45  ;;  %s1359_s11 = sld [smem:[#allocation7 + $0x85]] }
  0x80   :  { %v460_v56 = vadd.f32 %v458_v52, %v455_v49  ;;  %v462_v4 = vmul.f32 %v1011_v7, %v461_v53  ;;  %v463_v57 = vmul.f32 %v1016_v8, %v461_v53  ;;  %v466_v58 = vstv %s1277_s3  ;;  %s1365_s12 = sld [smem:[#allocation7 + $0x100]] }
  0x81   :  { %814 = vtanh.f32 %v440_v3  ;;  %v467_v5 = vmul.f32 %v1029_v15, %v466_v58  ;;  %v468_v59 = vmul.f32 %v1034_v16, %v466_v58  ;;  %v471_v62 = vstv %s1282_s18  ;;  %s1370_s13 = sld [smem:[#allocation7 + $0x101]] }
  0x82   :  { %816 = vtanh.f32 %v441_v54  ;;  %v464_v63 = vadd.f32 %v462_v4, %v459_v55  ;;  %v465_v6 = vadd.f32 %v463_v57, %v460_v56  ;;  %v472_v9 = vmul.f32 %v1044_v20, %v471_v62  ;;  %s1374_s14 = sld [smem:[#allocation8 + $0x1]] }
  0x83   :  { %v473_v7 = vmul.f32 %v1049_v21, %v471_v62  ;;  %v476_v10 = vstv %s1286_s19  ;;  %v481_v8 = vstv %s1289_s20  ;;  %v486_v11 = vstv %s1291_s21  ;;  %s1378_s16 = sld [smem:[#allocation7 + $0x102]] }
  0x84   :  { %v469_v12 = vadd.f32 %v467_v5, %v464_v63  ;;  %v470_v13 = vadd.f32 %v468_v59, %v465_v6  ;;  %v477_v15 = vmul.f32 %v1058_v26, %v476_v10  ;;  %v478_v16 = vmul.f32 %v1063_v27, %v476_v10  ;;  %s1387_s25 = sld [smem:[#allocation7 + $0x103]] }
  0x85   :  { %v799_v14 = vpop.eup %798  ;;  %v482_v17 = vmul.f32 %v1072_v30, %v481_v8  ;;  %v483_v20 = vmul.f32 %v1077_v31, %v481_v8  ;;  %v497_v22 = vstv %s1293_s22  ;;  %v500_v21 = vstv %s1297_s26  ;;  %s1394_s30 = sld [smem:[#allocation7 + $0x104]] }
  0x86   :  { %v801_v23 = vpop.eup %800  ;;  %v248_v24 = vmul.f32 0.5, %v799_v14  ;;  %v474_v25 = vadd.f32 %v472_v9, %v469_v12  ;;  %v475_v28 = vadd.f32 %v473_v7, %v470_v13  ;;  %v505_v29 = vstv %s1299_s23  ;;  %s1401_s0 = sld [smem:[#allocation7 + $0x105]] }
  0x87   :  { %v803_v0 = vpop.eup %802  ;;  %v249_v32 = vmul.f32 0.5, %v801_v23  ;;  %v510_v26 = vstv %s1303_s5  ;;  %v515_v18 = vstv %s1306_s27  ;;  %v520_v19 = vstv %s1310_s28  ;;  %s1407_s10 = sld [smem:[#allocation7 + $0x180]] }
  0x88   :  { %v805_v27 = vpop.eup %804  ;;  %v1337_v33 = vadd.f32 0.5, %v248_v24  ;;  %v297_v30 = vmul.f32 0.5, %v803_v0  ;;  %v479_v1 = vadd.f32 %v477_v15, %v474_v25  ;;  %v480_v31 = vadd.f32 %v478_v16, %v475_v28  ;;  %s1413_s15 = sld [smem:[#allocation8 + $0x2]] }
  0x89   :  { %v807_v34 = vpop.eup %806  ;;  %v1341_v35 = vadd.f32 0.5, %v249_v32  ;;  %v298_v60 = vmul.f32 0.5, %v805_v27  ;;  %v536_v61 = vstv %s1312_s29  ;;  %v539_v36 = vstv %s1317_s24  ;;  %s1418_s17 = sld [smem:[#allocation7 + $0x181]] }
  0x8a   :  { %v809_v37 = vpop.eup %808  ;;  %v1347_v50 = vadd.f32 0.5, %v297_v30  ;;  %v346_v51 = vmul.f32 0.5, %v807_v34  ;;  %v484_v38 = vadd.f32 %v482_v17, %v479_v1  ;;  %v485_v39 = vadd.f32 %v483_v20, %v480_v31  ;;  %s1423_s1 = sld [smem:[#allocation7 + $0x182]] }
  0x8b   :  { %v811_v40 = vpop.eup %810  ;;  %v1351_v41 = vadd.f32 0.5, %v298_v60  ;;  %v347_v42 = vmul.f32 0.5, %v809_v37  ;;  %v498_v43 = vmul.f32 %v497_v22, %v1337_v33  ;;  %v499_v44 = vmul.f32 %v497_v22, %v1341_v35  ;;  %s1445_s3 = sld [smem:[#allocation7 + $0x183]] }
  0x8c   :  { %v813_v45 = vpop.eup %812  ;;  %v1357_v46 = vadd.f32 0.5, %v346_v51  ;;  %v395_v47 = vmul.f32 0.5, %v811_v40  ;;  %v487_v48 = vadd.f32 %v486_v11, %v484_v38  ;;  %v488_v2 = vadd.f32 %v486_v11, %v485_v39  ;;  %s1449_s18 = sld [smem:[#allocation7 + $0x184]] }
  0x8d   :  { %v1361_v49 = vadd.f32 0.5, %v347_v42  ;;  %v396_v52 = vmul.f32 0.5, %v813_v45  ;;  %v501_v53 = vmul.f32 %v500_v21, %v1347_v50  ;;  %v502_v3 = vmul.f32 %v500_v21, %v1351_v41  ;;  %s1455_s19 = sld [smem:[#allocation7 + $0x185]] }
  0x8e   :  { %v815_v54 = vpop.eup %814  ;;  %v1367_v55 = vadd.f32 0.5, %v395_v47  ;;  %v489_v56 = vmul.f32 0.5, %v487_v48  ;;  %v490_v4 = vmul.f32 0.5, %v488_v2  ;;  %v506_v57 = vmul.f32 %v505_v29, %v1357_v46  ;;  %s1469_s20 = sld [smem:[#allocation8 + $0x3]] }
  0x8f   :  { %v817_v58 = vpop.eup %816  ;;  %v1372_v5 = vadd.f32 0.5, %v396_v52  ;;  %v444_v59 = vmul.f32 0.5, %v815_v54  ;;  %v503_v62 = vadd.f32 %v501_v53, %v498_v43  ;;  %v504_v63 = vadd.f32 %v502_v3, %v499_v44  ;;  %s1481_s21 = sld [smem:[#allocation10]] }
  0x90   :  { %v445_v6 = vmul.f32 0.5, %v817_v58  ;;  %818 = vtanh.f32 %v489_v56  ;;  %v507_v9 = vmul.f32 %v505_v29, %v1361_v49  ;;  %v511_v7 = vmul.f32 %v510_v26, %v1367_v55  ;;  %s776_s22 = sld [smem:[#allocation10 + $0x1]] }
  0x91   :  { %v1380_v10 = vadd.f32 0.5, %v444_v59  ;;  %820 = vtanh.f32 %v490_v4  ;;  %v508_v8 = vadd.f32 %v506_v57, %v503_v62  ;;  %v512_v11 = vmul.f32 %v510_v26, %v1372_v5  ;;  %s777_s26 = sld [smem:[#allocation10 + $0x2]] }
  0x92   :  { %v1383_v12 = vadd.f32 0.5, %v445_v6  ;;  %v509_v13 = vadd.f32 %v507_v9, %v504_v63  ;;  %v525_v15 = vstv %s1349_s2  ;;  %v537_v16 = vmul.f32 %v536_v61, %v1337_v33  ;;  %s778_s23 = sld [smem:[#allocation10 + $0x3]] }
  0x93   :  { %v513_v14 = vadd.f32 %v511_v7, %v508_v8  ;;  %v516_v17 = vmul.f32 %v515_v18, %v1380_v10  ;;  %v538_v20 = vmul.f32 %v536_v61, %v1341_v35  ;;  %v540_v22 = vmul.f32 %v539_v36, %v1347_v50 }
  0x94   :  { %v514_v21 = vadd.f32 %v512_v11, %v509_v13  ;;  %v517_v23 = vmul.f32 %v515_v18, %v1383_v12  ;;  %v541_v24 = vmul.f32 %v539_v36, %v1351_v41  ;;  %v544_v25 = vstv %s1339_s8 }
  0x95   :  { %v1403_v28 = vadd.f32 %v516_v17, %v513_v14  ;;  %v542_v29 = vadd.f32 %v540_v22, %v537_v16  ;;  %v545_v0 = vmul.f32 %v544_v25, %v1357_v46  ;;  %v546_v32 = vmul.f32 %v544_v25, %v1361_v49 }
  0x96   :  { %v1409_v26 = vadd.f32 %v517_v23, %v514_v21  ;;  %v543_v18 = vadd.f32 %v541_v24, %v538_v20  ;;  %v549_v27 = vstv %s1345_s9  ;;  %v554_v30 = vstv %s1355_s4 }
  0x97   :  { %v547_v1 = vadd.f32 %v545_v0, %v542_v29  ;;  %v550_v31 = vmul.f32 %v549_v27, %v1367_v55  ;;  %v551_v34 = vmul.f32 %v549_v27, %v1372_v5  ;;  %v555_v60 = vmul.f32 %v554_v30, %v1380_v10 }
  0x98   :  { %v548_v61 = vadd.f32 %v546_v32, %v543_v18  ;;  %v556_v36 = vmul.f32 %v554_v30, %v1383_v12  ;;  %v559_v37 = vstv %s1359_s11  ;;  %v564_v51 = vstv %s1374_s14 }
  0x99   :  { %v552_v38 = vadd.f32 %v550_v31, %v547_v1  ;;  %v575_v39 = vstv %s1365_s12  ;;  %v578_v40 = vstv %s1370_s13  ;;  %v583_v42 = vstv %s1378_s16 }
  0x9a   :  { %v553_v43 = vadd.f32 %v551_v34, %v548_v61  ;;  %v576_v44 = vmul.f32 %v575_v39, %v1337_v33  ;;  %v577_v45 = vmul.f32 %v575_v39, %v1341_v35  ;;  %v579_v47 = vmul.f32 %v578_v40, %v1347_v50 }
  0x9b   :  { %v557_v48 = vadd.f32 %v555_v60, %v552_v38  ;;  %v580_v2 = vmul.f32 %v578_v40, %v1351_v41  ;;  %v584_v52 = vmul.f32 %v583_v42, %v1357_v46  ;;  %v585_v53 = vmul.f32 %v583_v42, %v1361_v49 }
  0x9c   :  { %v558_v3 = vadd.f32 %v556_v36, %v553_v43  ;;  %v581_v54 = vadd.f32 %v579_v47, %v576_v44  ;;  %v588_v56 = vstv %s1387_s25  ;;  %v593_v4 = vstv %s1394_s30 }
  0x9d   :  { %v819_v57 = vpop.eup %818  ;;  %v582_v58 = vadd.f32 %v580_v2, %v577_v45  ;;  %v589_v59 = vmul.f32 %v588_v56, %v1367_v55  ;;  %v590_v62 = vmul.f32 %v588_v56, %v1372_v5  ;;  %v594_v63 = vmul.f32 %v593_v4, %v1380_v10 }
  0x9e   :  { %v821_v6 = vpop.eup %820  ;;  %v493_v9 = vmul.f32 0.5, %v819_v57  ;;  %v586_v7 = vadd.f32 %v584_v52, %v581_v54  ;;  %v595_v8 = vmul.f32 %v593_v4, %v1383_v12  ;;  %v598_v11 = vstv %s1401_s0 }
  0x9f   :  { %v494_v13 = vmul.f32 0.5, %v821_v6  ;;  %v587_v16 = vadd.f32 %v585_v53, %v582_v58  ;;  %v603_v14 = vstv %s1413_s15  ;;  %v614_v17 = vstv %s1407_s10 }
  0xa0   :  { %v495_v20 = vadd.f32 0.5, %v493_v9  ;;  %v591_v22 = vadd.f32 %v589_v59, %v586_v7  ;;  %v615_v21 = vmul.f32 %v614_v17, %v1337_v33  ;;  %v616_v23 = vmul.f32 %v614_v17, %v1341_v35 }
  0xa1   :  { %v496_v24 = vadd.f32 0.5, %v494_v13  ;;  %v592_v25 = vadd.f32 %v590_v62, %v587_v16  ;;  %v617_v29 = vstv %s1418_s17  ;;  %v622_v0 = vstv %s1423_s1 }
  0xa2   :  { %v521_v32 = vmul.f32 %v520_v19, %v495_v20  ;;  %v560_v18 = vmul.f32 %v559_v37, %v495_v20  ;;  %v596_v27 = vadd.f32 %v594_v63, %v591_v22  ;;  %v599_v30 = vmul.f32 %v598_v11, %v495_v20 }
  0xa3   :  { %v522_v1 = vmul.f32 %v520_v19, %v496_v24  ;;  %v561_v33 = vmul.f32 %v559_v37, %v496_v24  ;;  %v597_v35 = vadd.f32 %v595_v8, %v592_v25  ;;  %v600_v31 = vmul.f32 %v598_v11, %v496_v24 }
  0xa4   :  { %v523_v34 = vadd.f32 %v521_v32, %v1403_v28  ;;  %v562_v60 = vadd.f32 %v560_v18, %v557_v48  ;;  %v601_v61 = vadd.f32 %v599_v30, %v596_v27  ;;  %v618_v36 = vmul.f32 %v617_v29, %v1347_v50 }
  0xa5   :  { %v524_v38 = vadd.f32 %v522_v1, %v1409_v26  ;;  %v563_v39 = vadd.f32 %v561_v33, %v558_v3  ;;  %v602_v40 = vadd.f32 %v600_v31, %v597_v35  ;;  %v619_v42 = vmul.f32 %v617_v29, %v1351_v41 }
  0xa6   :  { %v526_v19 = vadd.f32 %v525_v15, %v523_v34  ;;  %v565_v37 = vadd.f32 %v564_v51, %v562_v60  ;;  %v604_v43 = vadd.f32 %v603_v14, %v601_v61  ;;  %v620_v44 = vadd.f32 %v618_v36, %v615_v21 }
  0xa7   :  { %v527_v45 = vadd.f32 %v525_v15, %v524_v38  ;;  %v566_v28 = vadd.f32 %v564_v51, %v563_v39  ;;  %v605_v47 = vadd.f32 %v603_v14, %v602_v40  ;;  %v621_v50 = vadd.f32 %v619_v42, %v616_v23 }
  0xa8   :  { %v528_v26 = vmul.f32 0.5, %v526_v19  ;;  %v567_v48 = vmul.f32 0.5, %v565_v37  ;;  %v606_v2 = vmul.f32 0.5, %v604_v43  ;;  %v623_v41 = vmul.f32 %v622_v0, %v1357_v46 }
  0xa9   :  { %v529_v52 = vmul.f32 0.5, %v527_v45  ;;  %v568_v53 = vmul.f32 0.5, %v566_v28  ;;  %v607_v3 = vmul.f32 0.5, %v605_v47  ;;  %v624_v54 = vmul.f32 %v622_v0, %v1361_v49 }
  0xaa   :  { %822 = vtanh.f32 %v528_v26  ;;  %v625_v15 = vadd.f32 %v623_v41, %v620_v44  ;;  %v627_v56 = vstv %s1445_s3  ;;  %v632_v4 = vstv %s1449_s18 }
  0xab   :  { %824 = vtanh.f32 %v529_v52  ;;  %v626_v51 = vadd.f32 %v624_v54, %v621_v50  ;;  %v628_v57 = vmul.f32 %v627_v56, %v1367_v55  ;;  %v629_v58 = vmul.f32 %v627_v56, %v1372_v5 }
  0xac   :  { %826 = vtanh.f32 %v567_v48  ;;  %v633_v46 = vmul.f32 %v632_v4, %v1380_v10  ;;  %v634_v59 = vmul.f32 %v632_v4, %v1383_v12  ;;  %v637_v62 = vstv %s1455_s19 }
  0xad   :  { %828 = vtanh.f32 %v568_v53  ;;  %v630_v63 = vadd.f32 %v628_v57, %v625_v15  ;;  %v631_v49 = vadd.f32 %v629_v58, %v626_v51  ;;  %v638_v6 = vmul.f32 %v637_v62, %v495_v20 }
  0xae   :  { %830 = vtanh.f32 %v606_v2  ;;  %v639_v9 = vmul.f32 %v637_v62, %v496_v24  ;;  %v642_v11 = vstv %s1469_s20  ;;  %v653_v32 = vstv %s1481_s21 }
  0xaf   :  { %832 = vtanh.f32 %v607_v3  ;;  %v635_v7 = vadd.f32 %v633_v46, %v630_v63  ;;  %v636_v8 = vadd.f32 %v634_v59, %v631_v49  ;;  %v656_v33 = vstv %s776_s22 }
  0xb0   :  { %v661_v40 = vstv %s777_s26  ;;  %v666_v50 = vstv %s778_s23  ;;  %v671_v3 = vstv %s1499_s6 }
  0xb1   :  { %v640_v13 = vadd.f32 %v638_v6, %v635_v7  ;;  %v641_v55 = vadd.f32 %v639_v9, %v636_v8 }
  0xb3   :  { %v643_v5 = vadd.f32 %v642_v11, %v640_v13  ;;  %v644_v16 = vadd.f32 %v642_v11, %v641_v55 }
  0xb5   :  { %v645_v10 = vmul.f32 0.5, %v643_v5  ;;  %v646_v12 = vmul.f32 0.5, %v644_v16 }
  0xb7   :  { %v823_v14 = vpop.eup %822  ;;  %834 = vtanh.f32 %v645_v10 }
  0xb8   :  { %v825_v17 = vpop.eup %824  ;;  %v532_v20 = vmul.f32 0.5, %v823_v14  ;;  %836 = vtanh.f32 %v646_v12 }
  0xb9   :  { %v827_v22 = vpop.eup %826  ;;  %v533_v21 = vmul.f32 0.5, %v825_v17 }
  0xba   :  { %v829_v23 = vpop.eup %828  ;;  %v571_v24 = vmul.f32 0.5, %v827_v22  ;;  %v534_v29 = vadd.f32 0.5, %v532_v20 }
  0xbb   :  { %v831_v25 = vpop.eup %830  ;;  %v572_v0 = vmul.f32 0.5, %v829_v23  ;;  %v535_v27 = vadd.f32 0.5, %v533_v21 }
  0xbc   :  { %v833_v18 = vpop.eup %832  ;;  %v573_v30 = vadd.f32 0.5, %v571_v24  ;;  %v610_v1 = vmul.f32 0.5, %v831_v25  ;;  %v654_v60 = vmul.f32 %v653_v32, %v534_v29 }
  0xbd   :  { %v574_v35 = vadd.f32 0.5, %v572_v0  ;;  %v611_v31 = vmul.f32 0.5, %v833_v18  ;;  %v655_v38 = vmul.f32 %v653_v32, %v535_v27 }
  0xbe   :  { %v612_v34 = vadd.f32 0.5, %v610_v1  ;;  %v657_v61 = vmul.f32 %v656_v33, %v573_v30 }
  0xbf   :  { %v613_v36 = vadd.f32 0.5, %v611_v31  ;;  %v658_v39 = vmul.f32 %v656_v33, %v574_v35 }
  0xc0   :  { %v659_v42 = vadd.f32 %v657_v61, %v654_v60  ;;  %v662_v19 = vmul.f32 %v661_v40, %v612_v34 }
  0xc1   :  { %v660_v43 = vadd.f32 %v658_v39, %v655_v38  ;;  %v663_v44 = vmul.f32 %v661_v40, %v613_v36 }
  0xc2   :  { %v664_v48 = vadd.f32 %v662_v19, %v659_v42 }
  0xc3   :  { %v665_v41 = vadd.f32 %v663_v44, %v660_v43 }
  0xc4   :  { %v835_v37 = vpop.eup %834 }
  0xc5   :  { %v837_v45 = vpop.eup %836  ;;  %v649_v28 = vmul.f32 0.5, %v835_v37 }
  0xc6   :  { %v650_v47 = vmul.f32 0.5, %v837_v45 }
  0xc7   :  { %v651_v26 = vadd.f32 0.5, %v649_v28 }
  0xc8   :  { %v652_v2 = vadd.f32 0.5, %v650_v47 }
  0xc9   :  { %v667_v52 = vmul.f32 %v666_v50, %v651_v26 }
  0xca   :  { %v668_v53 = vmul.f32 %v666_v50, %v652_v2 }
  0xcb   :  { %v669_v54 = vadd.f32 %v667_v52, %v664_v48 }
  0xcc   :  { %v670_v15 = vadd.f32 %v668_v53, %v665_v41 }
  0xcd   :  { %v672_v56 = vadd.f32 %v671_v3, %v669_v54 }
  0xce   :  { %v673_v4 = vadd.f32 %v671_v3, %v670_v15 }
  0xcf   :  { %v674_v51 = vmul.f32 0.5, %v672_v56 }
  0xd0   :  { %v675_v57 = vmul.f32 0.5, %v673_v4 }
  0xd1   :  { %838 = vtanh.f32 %v674_v51 }
  0xd2   :  { %840 = vtanh.f32 %v675_v57 }
  0xde   :  { %v839_v58 = vpop.eup %838 }
  0xdf   :  { %v841_v46 = vpop.eup %840  ;;  %v678_v59 = vmul.f32 0.5, %v839_v58 }
  0xe0   :  { %v679_v62 = vmul.f32 0.5, %v841_v46 }
  0xe1   :  { %v680_v63 = vadd.f32 0.5, %v678_v59 }
  0xe2   :  { %v681_v49 = vadd.f32 0.5, %v679_v62 }
  0xe3   :  { %682 = vst [vmem:[%s1500_s7] sm:$0xff] %v680_v63 }
  0xe4   :  { %683 = vst [vmem:[%s1500_s7 + $0x8] sm:$0xff] %v681_v49 }
  0xe5   :  { %688 = vsyncpa [#allocation4], 1 }
  0xe6   :  { %689 = vsyncpa [#allocation6], 1 }
  0xe7   :  { %690 = vsyncpa [#allocation9], 1 }

</bundles_post_ra>
